<compile_context>
chip_gen: v6e
topology: v6e:2x2x1
jax: 0.10.0
libtpu: 0.0.40
codegen_flags: <defaults>
</compile_context>

<pallas_src>
import math
from functools import partial

import jax
import jax.numpy as jnp
from jax.experimental import pallas as pl
from jax.experimental.pallas import tpu as pltpu

# --- model hyper-parameters (match the PyTorch module under test) -------------
HIDDEN = 32      # hidden_dim
NHEADS = 4       # nheads
FFN_DIM = 64     # dim_feedforward
DROPOUT = 0.0    # dropout probability -> every Dropout layer is identity
EPS = 1e-5       # nn.LayerNorm default eps

L_Q = 8          # number of queries (seq len of `queries`)
S_MEM = 16       # memory sequence length
BATCH = 2        # batch size


# =============================== kernel helpers ===============================
def _layernorm(x, gamma, beta):
    # PyTorch LayerNorm: biased variance over the last dim, eps=1e-5.
    mu = jnp.mean(x, axis=-1, keepdims=True)
    var = jnp.mean((x - mu) ** 2, axis=-1, keepdims=True)
    return (x - mu) * jax.lax.rsqrt(var + EPS) * gamma + beta


def _split_heads(x2d, nbatch, nheads, t, d):
    # (nbatch*t, nheads*d) -> (nbatch*nheads, t, d) using only static slices
    # plus a leading-dim concat (no tiled-dim reshape/transpose in-kernel).
    parts = []
    for b in range(nbatch):
        blk = x2d[b * t:(b + 1) * t, :]
        for h in range(nheads):
            parts.append(blk[:, h * d:(h + 1) * d][None])
    return jnp.concatenate(parts, axis=0)


def _merge_heads(x3d, nbatch, nheads, t, d):
    # (nbatch*nheads, t, d) -> (nbatch*t, nheads*d): lane-concat heads per
    # batch element (XLU work), then stack batch blocks along sublanes.
    rows = []
    for b in range(nbatch):
        rows.append(jnp.concatenate(
            [x3d[b * nheads + h] for h in range(nheads)], axis=-1))
    return jnp.concatenate(rows, axis=0)


def _attention(q_hb, k_hb, v_hb, w_o, b_o, scale, nbatch, nheads, tq, d):
    # q_hb: (NH, tq, d), k_hb/v_hb: (NH, tk, d) -> head-batched einsums (the
    # known-good flash-attention pattern), then one fused output projection.
    s = jnp.einsum('bqd,bkd->bqk', q_hb * scale, k_hb,
                   preferred_element_type=jnp.float32)
    s = s - jnp.max(s, axis=-1, keepdims=True)
    p = jnp.exp(s)
    p = p / jnp.sum(p, axis=-1, keepdims=True)      # exact divide (review note)
    ctx = jnp.einsum('bqk,bkd->bqd', p, v_hb,
                     preferred_element_type=jnp.float32)
    ctx = _merge_heads(ctx, nbatch, nheads, tq, d)                  # (N*tq, E)
    return jnp.dot(ctx, w_o, preferred_element_type=jnp.float32) + b_o


def _to_lane_dense(x, group):
    # (R, C) -> (R//group, C*group): pack `group` consecutive rows into one
    # 128-lane-wide row so the final write is an unmasked full-lane store.
    rows, _ = x.shape
    out_rows = []
    for i in range(rows // group):
        out_rows.append(jnp.concatenate(
            [x[i * group + j:i * group + j + 1, :] for j in range(group)],
            axis=1))
    return jnp.concatenate(out_rows, axis=0)


# ============================== fused layer kernel =============================
def decoder_layer_kernel(x_ref, mem_ref, w_ref, vec_ref, out_ref,
                         *, nbatch, nheads, lq, smem, ffdim, group):
    E = x_ref.shape[-1]
    d = E // nheads
    scale = 1.0 / math.sqrt(d)

    x = x_ref[...]        # (N*L, E)   batch-major rows
    mem = mem_ref[...]    # (N*S, E)
    w = w_ref[...]        # (E, 8E+2F) lane-major weight slab
    vp = vec_ref[...]     # (8, 4E)    bias / LayerNorm slab

    # -- unpack the two parameter slabs with static slices (one-time cost) -----
    w_qkv_sa = w[:, 0:3 * E]             # x   @ . -> [q|k|v]  (self-attn)
    w_q_ca   = w[:, 3 * E:4 * E]         # x   @ . -> q        (cross-attn)
    w_kv_ca  = w[:, 4 * E:6 * E]         # mem @ . -> [k|v]    (cross-attn)
    w_o_sa   = w[:, 6 * E:7 * E]
    w_o_ca   = w[:, 7 * E:8 * E]
    w_ff1    = w[:, 8 * E:8 * E + ffdim]
    off = 8 * E + ffdim
    w_ff2 = jnp.concatenate(             # (F, E), stored as F//E (E,E) chunks
        [w[:, off + i * E:off + (i + 1) * E] for i in range(ffdim // E)],
        axis=0)

    b_qkv_sa = vp[0:1, 0:3 * E]
    b_q_ca   = vp[0:1, 3 * E:4 * E]
    b_kv_ca  = vp[1:2, 0:2 * E]
    b_o_sa   = vp[1:2, 2 * E:3 * E]
    b_o_ca   = vp[1:2, 3 * E:4 * E]
    b_ff1    = vp[2:3, 0:ffdim]
    b_ff2    = vp[2:3, ffdim:ffdim + E]
    g1, be1  = vp[3:4, 0:E],         vp[3:4, E:2 * E]
    g2, be2  = vp[3:4, 2 * E:3 * E], vp[3:4, 3 * E:4 * E]
    g3, be3  = vp[4:5, 0:E],         vp[4:5, E:2 * E]

    # -- self-attention: ONE lane-dense (N*L,E)@(E,3E) projection --------------
    proj = jnp.dot(x, w_qkv_sa, preferred_element_type=jnp.float32) + b_qkv_sa
    q_hb = _split_heads(proj[:, 0:E],         nbatch, nheads, lq, d)
    k_hb = _split_heads(proj[:, E:2 * E],     nbatch, nheads, lq, d)
    v_hb = _split_heads(proj[:, 2 * E:3 * E], nbatch, nheads, lq, d)
    sa = _attention(q_hb, k_hb, v_hb, w_o_sa, b_o_sa, scale,
                    nbatch, nheads, lq, d)
    x = _layernorm(x + sa, g1, be1)          # residual + norm1 (dropout1 = id)

    # -- cross-attention --------------------------------------------------------
    q_ca = jnp.dot(x, w_q_ca, preferred_element_type=jnp.float32) + b_q_ca
    kv_m = jnp.dot(mem, w_kv_ca, preferred_element_type=jnp.float32) + b_kv_ca
    q_hb = _split_heads(q_ca,             nbatch, nheads, lq,   d)
    k_hb = _split_heads(kv_m[:, 0:E],     nbatch, nheads, smem, d)
    v_hb = _split_heads(kv_m[:, E:2 * E], nbatch, nheads, smem, d)
    ca = _attention(q_hb, k_hb, v_hb, w_o_ca, b_o_ca, scale,
                    nbatch, nheads, lq, d)
    x = _layernorm(x + ca, g2, be2)          # residual + norm2 (dropout2 = id)

    # -- FFN: Linear -> ReLU -> Linear ------------------------------------------
    hid = jnp.maximum(
        jnp.dot(x, w_ff1, preferred_element_type=jnp.float32) + b_ff1, 0.0)
    ff = jnp.dot(hid, w_ff2, preferred_element_type=jnp.float32) + b_ff2
    x = _layernorm(x + ff, g3, be3)          # residual + norm3 (dropout3 = id)

    # -- lane-dense store (unmasked full-lane vst) -------------------------------
    if group > 1:
        x = _to_lane_dense(x, group)
    out_ref[...] = x


# ================================== wrapper ===================================
def transformer_decoder_layer(queries, memory, w_slab, vec_slab,
                              nheads=NHEADS, ffdim=FFN_DIM):
    """queries: (L, N, E), memory: (S, N, E) -> (L, N, E)."""
    L, N, E = queries.shape
    S = memory.shape[0]

    # Fold the batch into the row dimension (batch-major rows).
    x = jnp.transpose(queries, (1, 0, 2)).reshape(N * L, E)
    mem = jnp.transpose(memory, (1, 0, 2)).reshape(N * S, E)

    # Lane-dense output layout: pack `group` consecutive (E,)-rows into one
    # 128-lane output row (group = 4 for E = 32 -> (4, 128) output block).
    group = 128 // E if (E < 128 and 128 % E == 0
                         and (N * L) % (128 // E) == 0) else 1
    out_shape = ((N * L) // group, E * group)

    kernel = partial(decoder_layer_kernel, nbatch=N, nheads=nheads,
                     lq=L, smem=S, ffdim=ffdim, group=group)

    out = pl.pallas_call(
        kernel,
        out_shape=jax.ShapeDtypeStruct(out_shape, jnp.float32),
        grid=(1,),   # whole problem (<1 MiB) fused in VMEM in a single step
        in_specs=[
            pl.BlockSpec((N * L, E), lambda i: (0, 0)),
            pl.BlockSpec((N * S, E), lambda i: (0, 0)),
            pl.BlockSpec(w_slab.shape, lambda i: (0, 0)),
            pl.BlockSpec(vec_slab.shape, lambda i: (0, 0)),
        ],
        out_specs=pl.BlockSpec(out_shape, lambda i: (0, 0)),
        compiler_params=pltpu.CompilerParams(
            dimension_semantics=("arbitrary",)),
    )(x, mem, w_slab, vec_slab)

    return jnp.transpose(out.reshape(N, L, E), (1, 0, 2))


# ================= parameter construction (PyTorch layout) & packing ===========
def make_torch_params(key, E=HIDDEN, F=FFN_DIM):
    """PyTorch-layout parameters of one TransformerDecoderLayer."""
    ks = jax.random.split(key, 12)

    def rnd(k, shape):
        return jax.random.normal(k, shape, jnp.float32) * 0.05

    ones, zeros = jnp.ones((E,), jnp.float32), jnp.zeros((E,), jnp.float32)
    return dict(
        sa_in_w=rnd(ks[0], (3 * E, E)), sa_in_b=rnd(ks[1], (3 * E,)),
        sa_out_w=rnd(ks[2], (E, E)),    sa_out_b=rnd(ks[3], (E,)),
        ca_in_w=rnd(ks[4], (3 * E, E)), ca_in_b=rnd(ks[5], (3 * E,)),
        ca_out_w=rnd(ks[6], (E, E)),    ca_out_b=rnd(ks[7], (E,)),
        w1=rnd(ks[8], (F, E)),          b1=rnd(ks[9], (F,)),
        w2=rnd(ks[10], (E, F)),         b2=rnd(ks[11], (E,)),
        g1=ones, be1=zeros, g2=ones, be2=zeros, g3=ones, be3=zeros,
    )


def pack_params(p, E=HIDDEN, F=FFN_DIM):
    """Pack all parameters into two lane-major slabs for the kernel."""
    assert F % E == 0, "dim_feedforward must be a multiple of hidden_dim"
    w2t = p['w2'].T                                    # (F, E)
    w_slab = jnp.concatenate(
        [p['sa_in_w'].T,                               # (E, 3E)  self q|k|v
         p['ca_in_w'][:E].T,                           # (E,  E)  cross q
         p['ca_in_w'][E:].T,                           # (E, 2E)  cross k|v
         p['sa_out_w'].T,                              # (E,  E)
         p['ca_out_w'].T,                              # (E,  E)
         p['w1'].T]                                    # (E,  F)
        + [w2t[i * E:(i + 1) * E] for i in range(F // E)],   # (E, F) total
        axis=1)                                        # (32, 8E+2F) = (32, 384)

    width = 4 * E

    def row(*parts):
        v = jnp.concatenate(parts)
        assert v.shape[0] <= width
        return jnp.pad(v, (0, width - v.shape[0]))[None, :]

    z = jnp.zeros((1, width), jnp.float32)
    vec_slab = jnp.concatenate([
        row(p['sa_in_b'], p['ca_in_b'][:E]),                   # row 0
        row(p['ca_in_b'][E:], p['sa_out_b'], p['ca_out_b']),   # row 1
        row(p['b1'], p['b2']),                                 # row 2
        row(p['g1'], p['be1'], p['g2'], p['be2']),             # row 3
        row(p['g3'], p['be3']),                                # row 4
        z, z, z,                                               # pad -> 8 rows
    ], axis=0)                                                 # (8, 128)
    return w_slab, vec_slab


# ======================= pure-JAX reference (PyTorch mirror) ===================
def _ref_ln(x, g, b):
    mu = jnp.mean(x, axis=-1, keepdims=True)
    var = jnp.mean((x - mu) ** 2, axis=-1, keepdims=True)
    return (x - mu) / jnp.sqrt(var + EPS) * g + b


def _ref_mha(q_in, kv_in, in_w, in_b, out_w, out_b, nheads):
    E = q_in.shape[-1]
    d = E // nheads
    q = q_in @ in_w[:E].T + in_b[:E]
    k = kv_in @ in_w[E:2 * E].T + in_b[E:2 * E]
    v = kv_in @ in_w[2 * E:].T + in_b[2 * E:]

    def split(t):
        return t.reshape(t.shape[0], nheads, d).transpose(1, 0, 2)

    q = split(q) * (1.0 / math.sqrt(d))
    k, v = split(k), split(v)
    s = jnp.einsum('htd,hsd->hts', q, k)
    a = jax.nn.softmax(s, axis=-1)
    ctx = jnp.einsum('hts,hsd->htd', a, v)
    ctx = ctx.transpose(1, 0, 2).reshape(q_in.shape[0], E)
    return ctx @ out_w.T + out_b


def reference_layer(queries, memory, p, nheads=NHEADS):
    """Pure-JAX mirror of the PyTorch forward (dropout = identity)."""
    def one(x, mem):
        sa = _ref_mha(x, x, p['sa_in_w'], p['sa_in_b'],
                      p['sa_out_w'], p['sa_out_b'], nheads)
        x = _ref_ln(x + sa, p['g1'], p['be1'])
        ca = _ref_mha(x, mem, p['ca_in_w'], p['ca_in_b'],
                      p['ca_out_w'], p['ca_out_b'], nheads)
        x = _ref_ln(x + ca, p['g2'], p['be2'])
        h = jax.nn.relu(x @ p['w1'].T + p['b1'])
        ff = h @ p['w2'].T + p['b2']
        return _ref_ln(x + ff, p['g3'], p['be3'])

    xb = jnp.transpose(queries, (1, 0, 2))    # (N, L, E)
    mb = jnp.transpose(memory, (1, 0, 2))     # (N, S, E)
    out = jax.vmap(one)(xb, mb)               # (N, L, E)
    return jnp.transpose(out, (1, 0, 2))


# ==================================== main =====================================
if __name__ == "__main__":
    key = jax.random.PRNGKey(0)
    k_q, k_m, k_p = jax.random.split(key, 3)

    # queries: (L, N, E) = (8, 2, 32); memory: (S, N, E) = (16, 2, 32)
    queries = jax.random.normal(k_q, (L_Q, BATCH, HIDDEN), jnp.float32)
    memory = jax.random.normal(k_m, (S_MEM, BATCH, HIDDEN), jnp.float32)

    torch_params = make_torch_params(k_p)
    w_slab, vec_slab = pack_params(torch_params)

    run = jax.jit(transformer_decoder_layer)
    out = jax.block_until_ready(run(queries, memory, w_slab, vec_slab))

    assert out.shape == (L_Q, BATCH, HIDDEN)
    assert bool(jnp.all(jnp.isfinite(out)))

    # Correctness check against a pure-JAX mirror of the PyTorch forward.
    with jax.default_matmul_precision("float32"):
        ref = reference_layer(queries, memory, torch_params)
    err = float(jnp.max(jnp.abs(out - ref)))
    assert err < 2e-2, f"kernel/reference mismatch: max abs err = {err}"

    print("KERNEL_OK")
</pallas_src>

<mosaic_0001>
module attributes {stable_mosaic.version = 11 : i64} {
  func.func @decoder_layer_kernel(%arg0: i32, %arg1: memref<16x32xf32, #tpu.memory_space<vmem>>, %arg2: memref<32x32xf32, #tpu.memory_space<vmem>>, %arg3: memref<32x384xf32, #tpu.memory_space<vmem>>, %arg4: memref<8x128xf32, #tpu.memory_space<vmem>>, %arg5: memref<4x128xf32, #tpu.memory_space<vmem>>) attributes {dimension_semantics = [#tpu.dimension_semantics<arbitrary>], iteration_bounds = array<i64: 1>, scalar_prefetch = 0 : i64, scratch_operands = 0 : i64, tpu.core_type = #tpu.core_type<tc>, window_params = [{pipeline_mode = #tpu.pipeline_mode<synchronous>, transform_indices = @transform_0, window_bounds = array<i64: 16, 32>}, {pipeline_mode = #tpu.pipeline_mode<synchronous>, transform_indices = @transform_1, window_bounds = array<i64: 32, 32>}, {pipeline_mode = #tpu.pipeline_mode<synchronous>, transform_indices = @transform_2, window_bounds = array<i64: 32, 384>}, {pipeline_mode = #tpu.pipeline_mode<synchronous>, transform_indices = @transform_3, window_bounds = array<i64: 8, 128>}, {pipeline_mode = #tpu.pipeline_mode<synchronous>, transform_indices = @transform_4, window_bounds = array<i64: 4, 128>}]} {
    %c0 = arith.constant 0 : index
    %c0_0 = arith.constant 0 : index
    %0 = vector.load %arg1[%c0, %c0_0] : memref<16x32xf32, #tpu.memory_space<vmem>>, vector<16x32xf32>
    %c0_1 = arith.constant 0 : index
    %c0_2 = arith.constant 0 : index
    %1 = vector.load %arg2[%c0_1, %c0_2] : memref<32x32xf32, #tpu.memory_space<vmem>>, vector<32x32xf32>
    %c0_3 = arith.constant 0 : index
    %c0_4 = arith.constant 0 : index
    %2 = vector.load %arg3[%c0_3, %c0_4] : memref<32x384xf32, #tpu.memory_space<vmem>>, vector<32x384xf32>
    %c0_5 = arith.constant 0 : index
    %c0_6 = arith.constant 0 : index
    %3 = vector.load %arg4[%c0_5, %c0_6] : memref<8x128xf32, #tpu.memory_space<vmem>>, vector<8x128xf32>
    %4 = vector.extract_strided_slice %2 {offsets = [0, 0], sizes = [32, 96], strides = [1, 1]} : vector<32x384xf32> to vector<32x96xf32>
    %5 = vector.extract_strided_slice %2 {offsets = [0, 96], sizes = [32, 32], strides = [1, 1]} : vector<32x384xf32> to vector<32x32xf32>
    %6 = vector.extract_strided_slice %2 {offsets = [0, 128], sizes = [32, 64], strides = [1, 1]} : vector<32x384xf32> to vector<32x64xf32>
    %7 = vector.extract_strided_slice %2 {offsets = [0, 192], sizes = [32, 32], strides = [1, 1]} : vector<32x384xf32> to vector<32x32xf32>
    %8 = vector.extract_strided_slice %2 {offsets = [0, 224], sizes = [32, 32], strides = [1, 1]} : vector<32x384xf32> to vector<32x32xf32>
    %9 = vector.extract_strided_slice %2 {offsets = [0, 256], sizes = [32, 64], strides = [1, 1]} : vector<32x384xf32> to vector<32x64xf32>
    %10 = vector.extract_strided_slice %2 {offsets = [0, 320], sizes = [32, 32], strides = [1, 1]} : vector<32x384xf32> to vector<32x32xf32>
    %11 = vector.extract_strided_slice %2 {offsets = [0, 352], sizes = [32, 32], strides = [1, 1]} : vector<32x384xf32> to vector<32x32xf32>
    %12 = tpu.concatenate %10, %11 in 0 : vector<32x32xf32>, vector<32x32xf32> -> vector<64x32xf32>
    %13 = vector.extract_strided_slice %3 {offsets = [0, 0], sizes = [1, 96], strides = [1, 1]} : vector<8x128xf32> to vector<1x96xf32>
    %14 = vector.extract_strided_slice %3 {offsets = [0, 96], sizes = [1, 32], strides = [1, 1]} : vector<8x128xf32> to vector<1x32xf32>
    %15 = vector.extract_strided_slice %3 {offsets = [1, 0], sizes = [1, 64], strides = [1, 1]} : vector<8x128xf32> to vector<1x64xf32>
    %16 = vector.extract_strided_slice %3 {offsets = [1, 64], sizes = [1, 32], strides = [1, 1]} : vector<8x128xf32> to vector<1x32xf32>
    %17 = vector.extract_strided_slice %3 {offsets = [1, 96], sizes = [1, 32], strides = [1, 1]} : vector<8x128xf32> to vector<1x32xf32>
    %18 = vector.extract_strided_slice %3 {offsets = [2, 0], sizes = [1, 64], strides = [1, 1]} : vector<8x128xf32> to vector<1x64xf32>
    %19 = vector.extract_strided_slice %3 {offsets = [2, 64], sizes = [1, 32], strides = [1, 1]} : vector<8x128xf32> to vector<1x32xf32>
    %20 = vector.extract_strided_slice %3 {offsets = [3, 0], sizes = [1, 32], strides = [1, 1]} : vector<8x128xf32> to vector<1x32xf32>
    %21 = vector.extract_strided_slice %3 {offsets = [3, 32], sizes = [1, 32], strides = [1, 1]} : vector<8x128xf32> to vector<1x32xf32>
    %22 = vector.extract_strided_slice %3 {offsets = [3, 64], sizes = [1, 32], strides = [1, 1]} : vector<8x128xf32> to vector<1x32xf32>
    %23 = vector.extract_strided_slice %3 {offsets = [3, 96], sizes = [1, 32], strides = [1, 1]} : vector<8x128xf32> to vector<1x32xf32>
    %24 = vector.extract_strided_slice %3 {offsets = [4, 0], sizes = [1, 32], strides = [1, 1]} : vector<8x128xf32> to vector<1x32xf32>
    %25 = vector.extract_strided_slice %3 {offsets = [4, 32], sizes = [1, 32], strides = [1, 1]} : vector<8x128xf32> to vector<1x32xf32>
    %cst = arith.constant dense<0.000000e+00> : vector<16x96xf32>
    %26 = tpu.matmul %0, %4, %cst {dimension_numbers = #tpu.dot_dimension_numbers<[1], [0], [0], [1], [0, 0, 1, 1], [], []>} : vector<16x32xf32>, vector<32x96xf32>, vector<16x96xf32> -> vector<16x96xf32>
    %27 = vector.broadcast %13 : vector<1x96xf32> to vector<16x96xf32>
    %28 = arith.addf %26, %27 : vector<16x96xf32>
    %29 = vector.extract_strided_slice %28 {offsets = [0, 0], sizes = [16, 32], strides = [1, 1]} : vector<16x96xf32> to vector<16x32xf32>
    %30 = vector.extract_strided_slice %29 {offsets = [0, 0], sizes = [8, 32], strides = [1, 1]} : vector<16x32xf32> to vector<8x32xf32>
    %31 = vector.extract_strided_slice %30 {offsets = [0, 0], sizes = [8, 8], strides = [1, 1]} : vector<8x32xf32> to vector<8x8xf32>
    %32 = vector.shape_cast %31 : vector<8x8xf32> to vector<1x8x8xf32>
    %33 = vector.extract_strided_slice %30 {offsets = [0, 8], sizes = [8, 8], strides = [1, 1]} : vector<8x32xf32> to vector<8x8xf32>
    %34 = vector.shape_cast %33 : vector<8x8xf32> to vector<1x8x8xf32>
    %35 = vector.extract_strided_slice %30 {offsets = [0, 16], sizes = [8, 8], strides = [1, 1]} : vector<8x32xf32> to vector<8x8xf32>
    %36 = vector.shape_cast %35 : vector<8x8xf32> to vector<1x8x8xf32>
    %37 = vector.extract_strided_slice %30 {offsets = [0, 24], sizes = [8, 8], strides = [1, 1]} : vector<8x32xf32> to vector<8x8xf32>
    %38 = vector.shape_cast %37 : vector<8x8xf32> to vector<1x8x8xf32>
    %39 = vector.extract_strided_slice %29 {offsets = [8, 0], sizes = [8, 32], strides = [1, 1]} : vector<16x32xf32> to vector<8x32xf32>
    %40 = vector.extract_strided_slice %39 {offsets = [0, 0], sizes = [8, 8], strides = [1, 1]} : vector<8x32xf32> to vector<8x8xf32>
    %41 = vector.shape_cast %40 : vector<8x8xf32> to vector<1x8x8xf32>
    %42 = vector.extract_strided_slice %39 {offsets = [0, 8], sizes = [8, 8], strides = [1, 1]} : vector<8x32xf32> to vector<8x8xf32>
    %43 = vector.shape_cast %42 : vector<8x8xf32> to vector<1x8x8xf32>
    %44 = vector.extract_strided_slice %39 {offsets = [0, 16], sizes = [8, 8], strides = [1, 1]} : vector<8x32xf32> to vector<8x8xf32>
    %45 = vector.shape_cast %44 : vector<8x8xf32> to vector<1x8x8xf32>
    %46 = vector.extract_strided_slice %39 {offsets = [0, 24], sizes = [8, 8], strides = [1, 1]} : vector<8x32xf32> to vector<8x8xf32>
    %47 = vector.shape_cast %46 : vector<8x8xf32> to vector<1x8x8xf32>
    %48 = tpu.concatenate %32, %34, %36, %38, %41, %43, %45, %47 in 0 : vector<1x8x8xf32>, vector<1x8x8xf32>, vector<1x8x8xf32>, vector<1x8x8xf32>, vector<1x8x8xf32>, vector<1x8x8xf32>, vector<1x8x8xf32>, vector<1x8x8xf32> -> vector<8x8x8xf32>
    %49 = vector.extract_strided_slice %28 {offsets = [0, 32], sizes = [16, 32], strides = [1, 1]} : vector<16x96xf32> to vector<16x32xf32>
    %50 = vector.extract_strided_slice %49 {offsets = [0, 0], sizes = [8, 32], strides = [1, 1]} : vector<16x32xf32> to vector<8x32xf32>
    %51 = vector.extract_strided_slice %50 {offsets = [0, 0], sizes = [8, 8], strides = [1, 1]} : vector<8x32xf32> to vector<8x8xf32>
    %52 = vector.shape_cast %51 : vector<8x8xf32> to vector<1x8x8xf32>
    %53 = vector.extract_strided_slice %50 {offsets = [0, 8], sizes = [8, 8], strides = [1, 1]} : vector<8x32xf32> to vector<8x8xf32>
    %54 = vector.shape_cast %53 : vector<8x8xf32> to vector<1x8x8xf32>
    %55 = vector.extract_strided_slice %50 {offsets = [0, 16], sizes = [8, 8], strides = [1, 1]} : vector<8x32xf32> to vector<8x8xf32>
    %56 = vector.shape_cast %55 : vector<8x8xf32> to vector<1x8x8xf32>
    %57 = vector.extract_strided_slice %50 {offsets = [0, 24], sizes = [8, 8], strides = [1, 1]} : vector<8x32xf32> to vector<8x8xf32>
    %58 = vector.shape_cast %57 : vector<8x8xf32> to vector<1x8x8xf32>
    %59 = vector.extract_strided_slice %49 {offsets = [8, 0], sizes = [8, 32], strides = [1, 1]} : vector<16x32xf32> to vector<8x32xf32>
    %60 = vector.extract_strided_slice %59 {offsets = [0, 0], sizes = [8, 8], strides = [1, 1]} : vector<8x32xf32> to vector<8x8xf32>
    %61 = vector.shape_cast %60 : vector<8x8xf32> to vector<1x8x8xf32>
    %62 = vector.extract_strided_slice %59 {offsets = [0, 8], sizes = [8, 8], strides = [1, 1]} : vector<8x32xf32> to vector<8x8xf32>
    %63 = vector.shape_cast %62 : vector<8x8xf32> to vector<1x8x8xf32>
    %64 = vector.extract_strided_slice %59 {offsets = [0, 16], sizes = [8, 8], strides = [1, 1]} : vector<8x32xf32> to vector<8x8xf32>
    %65 = vector.shape_cast %64 : vector<8x8xf32> to vector<1x8x8xf32>
    %66 = vector.extract_strided_slice %59 {offsets = [0, 24], sizes = [8, 8], strides = [1, 1]} : vector<8x32xf32> to vector<8x8xf32>
    %67 = vector.shape_cast %66 : vector<8x8xf32> to vector<1x8x8xf32>
    %68 = tpu.concatenate %52, %54, %56, %58, %61, %63, %65, %67 in 0 : vector<1x8x8xf32>, vector<1x8x8xf32>, vector<1x8x8xf32>, vector<1x8x8xf32>, vector<1x8x8xf32>, vector<1x8x8xf32>, vector<1x8x8xf32>, vector<1x8x8xf32> -> vector<8x8x8xf32>
    %69 = vector.extract_strided_slice %28 {offsets = [0, 64], sizes = [16, 32], strides = [1, 1]} : vector<16x96xf32> to vector<16x32xf32>
    %70 = vector.extract_strided_slice %69 {offsets = [0, 0], sizes = [8, 32], strides = [1, 1]} : vector<16x32xf32> to vector<8x32xf32>
    %71 = vector.extract_strided_slice %70 {offsets = [0, 0], sizes = [8, 8], strides = [1, 1]} : vector<8x32xf32> to vector<8x8xf32>
    %72 = vector.shape_cast %71 : vector<8x8xf32> to vector<1x8x8xf32>
    %73 = vector.extract_strided_slice %70 {offsets = [0, 8], sizes = [8, 8], strides = [1, 1]} : vector<8x32xf32> to vector<8x8xf32>
    %74 = vector.shape_cast %73 : vector<8x8xf32> to vector<1x8x8xf32>
    %75 = vector.extract_strided_slice %70 {offsets = [0, 16], sizes = [8, 8], strides = [1, 1]} : vector<8x32xf32> to vector<8x8xf32>
    %76 = vector.shape_cast %75 : vector<8x8xf32> to vector<1x8x8xf32>
    %77 = vector.extract_strided_slice %70 {offsets = [0, 24], sizes = [8, 8], strides = [1, 1]} : vector<8x32xf32> to vector<8x8xf32>
    %78 = vector.shape_cast %77 : vector<8x8xf32> to vector<1x8x8xf32>
    %79 = vector.extract_strided_slice %69 {offsets = [8, 0], sizes = [8, 32], strides = [1, 1]} : vector<16x32xf32> to vector<8x32xf32>
    %80 = vector.extract_strided_slice %79 {offsets = [0, 0], sizes = [8, 8], strides = [1, 1]} : vector<8x32xf32> to vector<8x8xf32>
    %81 = vector.shape_cast %80 : vector<8x8xf32> to vector<1x8x8xf32>
    %82 = vector.extract_strided_slice %79 {offsets = [0, 8], sizes = [8, 8], strides = [1, 1]} : vector<8x32xf32> to vector<8x8xf32>
    %83 = vector.shape_cast %82 : vector<8x8xf32> to vector<1x8x8xf32>
    %84 = vector.extract_strided_slice %79 {offsets = [0, 16], sizes = [8, 8], strides = [1, 1]} : vector<8x32xf32> to vector<8x8xf32>
    %85 = vector.shape_cast %84 : vector<8x8xf32> to vector<1x8x8xf32>
    %86 = vector.extract_strided_slice %79 {offsets = [0, 24], sizes = [8, 8], strides = [1, 1]} : vector<8x32xf32> to vector<8x8xf32>
    %87 = vector.shape_cast %86 : vector<8x8xf32> to vector<1x8x8xf32>
    %88 = tpu.concatenate %72, %74, %76, %78, %81, %83, %85, %87 in 0 : vector<1x8x8xf32>, vector<1x8x8xf32>, vector<1x8x8xf32>, vector<1x8x8xf32>, vector<1x8x8xf32>, vector<1x8x8xf32>, vector<1x8x8xf32>, vector<1x8x8xf32> -> vector<8x8x8xf32>
    %cst_7 = arith.constant 0.353553385 : f32
    %89 = vector.broadcast %cst_7 : f32 to vector<8x8x8xf32>
    %90 = arith.mulf %48, %89 : vector<8x8x8xf32>
    "tpu.trace_start"() <{level = 10 : i32, message = "bqd,bkd->bqk"}> : () -> ()
    %cst_8 = arith.constant dense<0.000000e+00> : vector<8x8x8xf32>
    %91 = tpu.matmul %90, %68, %cst_8 {dimension_numbers = #tpu.dot_dimension_numbers<[2], [2], [1], [1], [0, 0, 0, 1, 1, 1], [0], [0]>} : vector<8x8x8xf32>, vector<8x8x8xf32>, vector<8x8x8xf32> -> vector<8x8x8xf32>
    "tpu.trace_stop"() : () -> ()
    %cst_9 = arith.constant dense<0xFF800000> : vector<8x8xf32>
    %92 = vector.multi_reduction <maximumf>, %91, %cst_9 [2] : vector<8x8x8xf32> to vector<8x8xf32>
    %93 = vector.shape_cast %92 : vector<8x8xf32> to vector<8x8x1xf32>
    %94 = vector.broadcast %93 : vector<8x8x1xf32> to vector<8x8x8xf32>
    %95 = arith.subf %91, %94 : vector<8x8x8xf32>
    %96 = math.exp %95 : vector<8x8x8xf32>
    %cst_10 = arith.constant dense<0.000000e+00> : vector<8x8xf32>
    %97 = vector.multi_reduction <add>, %96, %cst_10 [2] : vector<8x8x8xf32> to vector<8x8xf32>
    %98 = vector.shape_cast %97 : vector<8x8xf32> to vector<8x8x1xf32>
    %99 = vector.broadcast %98 : vector<8x8x1xf32> to vector<8x8x8xf32>
    %100 = arith.divf %96, %99 : vector<8x8x8xf32>
    "tpu.trace_start"() <{level = 10 : i32, message = "bqk,bkd->bqd"}> : () -> ()
    %cst_11 = arith.constant dense<0.000000e+00> : vector<8x8x8xf32>
    %101 = tpu.matmul %100, %88, %cst_11 {dimension_numbers = #tpu.dot_dimension_numbers<[2], [1], [1], [2], [0, 0, 0, 1, 1, 2], [0], [0]>} : vector<8x8x8xf32>, vector<8x8x8xf32>, vector<8x8x8xf32> -> vector<8x8x8xf32>
    "tpu.trace_stop"() : () -> ()
    %102 = vector.extract_strided_slice %101 {offsets = [0, 0, 0], sizes = [1, 8, 8], strides = [1, 1, 1]} : vector<8x8x8xf32> to vector<1x8x8xf32>
    %103 = vector.shape_cast %102 : vector<1x8x8xf32> to vector<8x8xf32>
    %104 = vector.extract_strided_slice %101 {offsets = [1, 0, 0], sizes = [1, 8, 8], strides = [1, 1, 1]} : vector<8x8x8xf32> to vector<1x8x8xf32>
    %105 = vector.shape_cast %104 : vector<1x8x8xf32> to vector<8x8xf32>
    %106 = vector.extract_strided_slice %101 {offsets = [2, 0, 0], sizes = [1, 8, 8], strides = [1, 1, 1]} : vector<8x8x8xf32> to vector<1x8x8xf32>
    %107 = vector.shape_cast %106 : vector<1x8x8xf32> to vector<8x8xf32>
    %108 = vector.extract_strided_slice %101 {offsets = [3, 0, 0], sizes = [1, 8, 8], strides = [1, 1, 1]} : vector<8x8x8xf32> to vector<1x8x8xf32>
    %109 = vector.shape_cast %108 : vector<1x8x8xf32> to vector<8x8xf32>
    %110 = tpu.concatenate %103, %105, %107, %109 in 1 : vector<8x8xf32>, vector<8x8xf32>, vector<8x8xf32>, vector<8x8xf32> -> vector<8x32xf32>
    %111 = vector.extract_strided_slice %101 {offsets = [4, 0, 0], sizes = [1, 8, 8], strides = [1, 1, 1]} : vector<8x8x8xf32> to vector<1x8x8xf32>
    %112 = vector.shape_cast %111 : vector<1x8x8xf32> to vector<8x8xf32>
    %113 = vector.extract_strided_slice %101 {offsets = [5, 0, 0], sizes = [1, 8, 8], strides = [1, 1, 1]} : vector<8x8x8xf32> to vector<1x8x8xf32>
    %114 = vector.shape_cast %113 : vector<1x8x8xf32> to vector<8x8xf32>
    %115 = vector.extract_strided_slice %101 {offsets = [6, 0, 0], sizes = [1, 8, 8], strides = [1, 1, 1]} : vector<8x8x8xf32> to vector<1x8x8xf32>
    %116 = vector.shape_cast %115 : vector<1x8x8xf32> to vector<8x8xf32>
    %117 = vector.extract_strided_slice %101 {offsets = [7, 0, 0], sizes = [1, 8, 8], strides = [1, 1, 1]} : vector<8x8x8xf32> to vector<1x8x8xf32>
    %118 = vector.shape_cast %117 : vector<1x8x8xf32> to vector<8x8xf32>
    %119 = tpu.concatenate %112, %114, %116, %118 in 1 : vector<8x8xf32>, vector<8x8xf32>, vector<8x8xf32>, vector<8x8xf32> -> vector<8x32xf32>
    %120 = tpu.concatenate %110, %119 in 0 : vector<8x32xf32>, vector<8x32xf32> -> vector<16x32xf32>
    %cst_12 = arith.constant dense<0.000000e+00> : vector<16x32xf32>
    %121 = tpu.matmul %120, %7, %cst_12 {dimension_numbers = #tpu.dot_dimension_numbers<[1], [0], [0], [1], [0, 0, 1, 1], [], []>} : vector<16x32xf32>, vector<32x32xf32>, vector<16x32xf32> -> vector<16x32xf32>
    %122 = vector.broadcast %16 : vector<1x32xf32> to vector<16x32xf32>
    %123 = arith.addf %121, %122 : vector<16x32xf32>
    %124 = arith.addf %0, %123 : vector<16x32xf32>
    %cst_13 = arith.constant dense<0.000000e+00> : vector<16xf32>
    %125 = vector.multi_reduction <add>, %124, %cst_13 [1] : vector<16x32xf32> to vector<16xf32>
    %126 = vector.shape_cast %125 : vector<16xf32> to vector<16x1xf32>
    %cst_14 = arith.constant 3.200000e+01 : f32
    %127 = vector.broadcast %cst_14 : f32 to vector<16x1xf32>
    %128 = arith.divf %126, %127 : vector<16x1xf32>
    %129 = vector.broadcast %128 : vector<16x1xf32> to vector<16x32xf32>
    %130 = arith.subf %124, %129 : vector<16x32xf32>
    %131 = arith.mulf %130, %130 : vector<16x32xf32>
    %cst_15 = arith.constant dense<0.000000e+00> : vector<16xf32>
    %132 = vector.multi_reduction <add>, %131, %cst_15 [1] : vector<16x32xf32> to vector<16xf32>
    %133 = vector.shape_cast %132 : vector<16xf32> to vector<16x1xf32>
    %cst_16 = arith.constant 3.200000e+01 : f32
    %134 = vector.broadcast %cst_16 : f32 to vector<16x1xf32>
    %135 = arith.divf %133, %134 : vector<16x1xf32>
    %136 = vector.broadcast %128 : vector<16x1xf32> to vector<16x32xf32>
    %137 = arith.subf %124, %136 : vector<16x32xf32>
    %cst_17 = arith.constant 9.99999974E-6 : f32
    %138 = vector.broadcast %cst_17 : f32 to vector<16x1xf32>
    %139 = arith.addf %135, %138 : vector<16x1xf32>
    %140 = math.rsqrt %139 : vector<16x1xf32>
    %141 = vector.broadcast %140 : vector<16x1xf32> to vector<16x32xf32>
    %142 = arith.mulf %137, %141 : vector<16x32xf32>
    %143 = vector.broadcast %20 : vector<1x32xf32> to vector<16x32xf32>
    %144 = arith.mulf %142, %143 : vector<16x32xf32>
    %145 = vector.broadcast %21 : vector<1x32xf32> to vector<16x32xf32>
    %146 = arith.addf %144, %145 : vector<16x32xf32>
    %cst_18 = arith.constant dense<0.000000e+00> : vector<16x32xf32>
    %147 = tpu.matmul %146, %5, %cst_18 {dimension_numbers = #tpu.dot_dimension_numbers<[1], [0], [0], [1], [0, 0, 1, 1], [], []>} : vector<16x32xf32>, vector<32x32xf32>, vector<16x32xf32> -> vector<16x32xf32>
    %148 = vector.broadcast %14 : vector<1x32xf32> to vector<16x32xf32>
    %149 = arith.addf %147, %148 : vector<16x32xf32>
    %cst_19 = arith.constant dense<0.000000e+00> : vector<32x64xf32>
    %150 = tpu.matmul %1, %6, %cst_19 {dimension_numbers = #tpu.dot_dimension_numbers<[1], [0], [0], [1], [0, 0, 1, 1], [], []>} : vector<32x32xf32>, vector<32x64xf32>, vector<32x64xf32> -> vector<32x64xf32>
    %151 = vector.broadcast %15 : vector<1x64xf32> to vector<32x64xf32>
    %152 = arith.addf %150, %151 : vector<32x64xf32>
    %153 = vector.extract_strided_slice %149 {offsets = [0, 0], sizes = [8, 32], strides = [1, 1]} : vector<16x32xf32> to vector<8x32xf32>
    %154 = vector.extract_strided_slice %153 {offsets = [0, 0], sizes = [8, 8], strides = [1, 1]} : vector<8x32xf32> to vector<8x8xf32>
    %155 = vector.shape_cast %154 : vector<8x8xf32> to vector<1x8x8xf32>
    %156 = vector.extract_strided_slice %153 {offsets = [0, 8], sizes = [8, 8], strides = [1, 1]} : vector<8x32xf32> to vector<8x8xf32>
    %157 = vector.shape_cast %156 : vector<8x8xf32> to vector<1x8x8xf32>
    %158 = vector.extract_strided_slice %153 {offsets = [0, 16], sizes = [8, 8], strides = [1, 1]} : vector<8x32xf32> to vector<8x8xf32>
    %159 = vector.shape_cast %158 : vector<8x8xf32> to vector<1x8x8xf32>
    %160 = vector.extract_strided_slice %153 {offsets = [0, 24], sizes = [8, 8], strides = [1, 1]} : vector<8x32xf32> to vector<8x8xf32>
    %161 = vector.shape_cast %160 : vector<8x8xf32> to vector<1x8x8xf32>
    %162 = vector.extract_strided_slice %149 {offsets = [8, 0], sizes = [8, 32], strides = [1, 1]} : vector<16x32xf32> to vector<8x32xf32>
    %163 = vector.extract_strided_slice %162 {offsets = [0, 0], sizes = [8, 8], strides = [1, 1]} : vector<8x32xf32> to vector<8x8xf32>
    %164 = vector.shape_cast %163 : vector<8x8xf32> to vector<1x8x8xf32>
    %165 = vector.extract_strided_slice %162 {offsets = [0, 8], sizes = [8, 8], strides = [1, 1]} : vector<8x32xf32> to vector<8x8xf32>
    %166 = vector.shape_cast %165 : vector<8x8xf32> to vector<1x8x8xf32>
    %167 = vector.extract_strided_slice %162 {offsets = [0, 16], sizes = [8, 8], strides = [1, 1]} : vector<8x32xf32> to vector<8x8xf32>
    %168 = vector.shape_cast %167 : vector<8x8xf32> to vector<1x8x8xf32>
    %169 = vector.extract_strided_slice %162 {offsets = [0, 24], sizes = [8, 8], strides = [1, 1]} : vector<8x32xf32> to vector<8x8xf32>
    %170 = vector.shape_cast %169 : vector<8x8xf32> to vector<1x8x8xf32>
    %171 = tpu.concatenate %155, %157, %159, %161, %164, %166, %168, %170 in 0 : vector<1x8x8xf32>, vector<1x8x8xf32>, vector<1x8x8xf32>, vector<1x8x8xf32>, vector<1x8x8xf32>, vector<1x8x8xf32>, vector<1x8x8xf32>, vector<1x8x8xf32> -> vector<8x8x8xf32>
    %172 = vector.extract_strided_slice %152 {offsets = [0, 0], sizes = [32, 32], strides = [1, 1]} : vector<32x64xf32> to vector<32x32xf32>
    %173 = vector.extract_strided_slice %172 {offsets = [0, 0], sizes = [16, 32], strides = [1, 1]} : vector<32x32xf32> to vector<16x32xf32>
    %174 = vector.extract_strided_slice %173 {offsets = [0, 0], sizes = [16, 8], strides = [1, 1]} : vector<16x32xf32> to vector<16x8xf32>
    %175 = vector.shape_cast %174 : vector<16x8xf32> to vector<1x16x8xf32>
    %176 = vector.extract_strided_slice %173 {offsets = [0, 8], sizes = [16, 8], strides = [1, 1]} : vector<16x32xf32> to vector<16x8xf32>
    %177 = vector.shape_cast %176 : vector<16x8xf32> to vector<1x16x8xf32>
    %178 = vector.extract_strided_slice %173 {offsets = [0, 16], sizes = [16, 8], strides = [1, 1]} : vector<16x32xf32> to vector<16x8xf32>
    %179 = vector.shape_cast %178 : vector<16x8xf32> to vector<1x16x8xf32>
    %180 = vector.extract_strided_slice %173 {offsets = [0, 24], sizes = [16, 8], strides = [1, 1]} : vector<16x32xf32> to vector<16x8xf32>
    %181 = vector.shape_cast %180 : vector<16x8xf32> to vector<1x16x8xf32>
    %182 = vector.extract_strided_slice %172 {offsets = [16, 0], sizes = [16, 32], strides = [1, 1]} : vector<32x32xf32> to vector<16x32xf32>
    %183 = vector.extract_strided_slice %182 {offsets = [0, 0], sizes = [16, 8], strides = [1, 1]} : vector<16x32xf32> to vector<16x8xf32>
    %184 = vector.shape_cast %183 : vector<16x8xf32> to vector<1x16x8xf32>
    %185 = vector.extract_strided_slice %182 {offsets = [0, 8], sizes = [16, 8], strides = [1, 1]} : vector<16x32xf32> to vector<16x8xf32>
    %186 = vector.shape_cast %185 : vector<16x8xf32> to vector<1x16x8xf32>
    %187 = vector.extract_strided_slice %182 {offsets = [0, 16], sizes = [16, 8], strides = [1, 1]} : vector<16x32xf32> to vector<16x8xf32>
    %188 = vector.shape_cast %187 : vector<16x8xf32> to vector<1x16x8xf32>
    %189 = vector.extract_strided_slice %182 {offsets = [0, 24], sizes = [16, 8], strides = [1, 1]} : vector<16x32xf32> to vector<16x8xf32>
    %190 = vector.shape_cast %189 : vector<16x8xf32> to vector<1x16x8xf32>
    %191 = tpu.concatenate %175, %177, %179, %181, %184, %186, %188, %190 in 0 : vector<1x16x8xf32>, vector<1x16x8xf32>, vector<1x16x8xf32>, vector<1x16x8xf32>, vector<1x16x8xf32>, vector<1x16x8xf32>, vector<1x16x8xf32>, vector<1x16x8xf32> -> vector<8x16x8xf32>
    %192 = vector.extract_strided_slice %152 {offsets = [0, 32], sizes = [32, 32], strides = [1, 1]} : vector<32x64xf32> to vector<32x32xf32>
    %193 = vector.extract_strided_slice %192 {offsets = [0, 0], sizes = [16, 32], strides = [1, 1]} : vector<32x32xf32> to vector<16x32xf32>
    %194 = vector.extract_strided_slice %193 {offsets = [0, 0], sizes = [16, 8], strides = [1, 1]} : vector<16x32xf32> to vector<16x8xf32>
    %195 = vector.shape_cast %194 : vector<16x8xf32> to vector<1x16x8xf32>
    %196 = vector.extract_strided_slice %193 {offsets = [0, 8], sizes = [16, 8], strides = [1, 1]} : vector<16x32xf32> to vector<16x8xf32>
    %197 = vector.shape_cast %196 : vector<16x8xf32> to vector<1x16x8xf32>
    %198 = vector.extract_strided_slice %193 {offsets = [0, 16], sizes = [16, 8], strides = [1, 1]} : vector<16x32xf32> to vector<16x8xf32>
    %199 = vector.shape_cast %198 : vector<16x8xf32> to vector<1x16x8xf32>
    %200 = vector.extract_strided_slice %193 {offsets = [0, 24], sizes = [16, 8], strides = [1, 1]} : vector<16x32xf32> to vector<16x8xf32>
    %201 = vector.shape_cast %200 : vector<16x8xf32> to vector<1x16x8xf32>
    %202 = vector.extract_strided_slice %192 {offsets = [16, 0], sizes = [16, 32], strides = [1, 1]} : vector<32x32xf32> to vector<16x32xf32>
    %203 = vector.extract_strided_slice %202 {offsets = [0, 0], sizes = [16, 8], strides = [1, 1]} : vector<16x32xf32> to vector<16x8xf32>
    %204 = vector.shape_cast %203 : vector<16x8xf32> to vector<1x16x8xf32>
    %205 = vector.extract_strided_slice %202 {offsets = [0, 8], sizes = [16, 8], strides = [1, 1]} : vector<16x32xf32> to vector<16x8xf32>
    %206 = vector.shape_cast %205 : vector<16x8xf32> to vector<1x16x8xf32>
    %207 = vector.extract_strided_slice %202 {offsets = [0, 16], sizes = [16, 8], strides = [1, 1]} : vector<16x32xf32> to vector<16x8xf32>
    %208 = vector.shape_cast %207 : vector<16x8xf32> to vector<1x16x8xf32>
    %209 = vector.extract_strided_slice %202 {offsets = [0, 24], sizes = [16, 8], strides = [1, 1]} : vector<16x32xf32> to vector<16x8xf32>
    %210 = vector.shape_cast %209 : vector<16x8xf32> to vector<1x16x8xf32>
    %211 = tpu.concatenate %195, %197, %199, %201, %204, %206, %208, %210 in 0 : vector<1x16x8xf32>, vector<1x16x8xf32>, vector<1x16x8xf32>, vector<1x16x8xf32>, vector<1x16x8xf32>, vector<1x16x8xf32>, vector<1x16x8xf32>, vector<1x16x8xf32> -> vector<8x16x8xf32>
    %cst_20 = arith.constant 0.353553385 : f32
    %212 = vector.broadcast %cst_20 : f32 to vector<8x8x8xf32>
    %213 = arith.mulf %171, %212 : vector<8x8x8xf32>
    "tpu.trace_start"() <{level = 10 : i32, message = "bqd,bkd->bqk"}> : () -> ()
    %cst_21 = arith.constant dense<0.000000e+00> : vector<8x8x16xf32>
    %214 = tpu.matmul %213, %191, %cst_21 {dimension_numbers = #tpu.dot_dimension_numbers<[2], [2], [1], [1], [0, 0, 0, 1, 1, 1], [0], [0]>} : vector<8x8x8xf32>, vector<8x16x8xf32>, vector<8x8x16xf32> -> vector<8x8x16xf32>
    "tpu.trace_stop"() : () -> ()
    %cst_22 = arith.constant dense<0xFF800000> : vector<8x8xf32>
    %215 = vector.multi_reduction <maximumf>, %214, %cst_22 [2] : vector<8x8x16xf32> to vector<8x8xf32>
    %216 = vector.shape_cast %215 : vector<8x8xf32> to vector<8x8x1xf32>
    %217 = vector.broadcast %216 : vector<8x8x1xf32> to vector<8x8x16xf32>
    %218 = arith.subf %214, %217 : vector<8x8x16xf32>
    %219 = math.exp %218 : vector<8x8x16xf32>
    %cst_23 = arith.constant dense<0.000000e+00> : vector<8x8xf32>
    %220 = vector.multi_reduction <add>, %219, %cst_23 [2] : vector<8x8x16xf32> to vector<8x8xf32>
    %221 = vector.shape_cast %220 : vector<8x8xf32> to vector<8x8x1xf32>
    %222 = vector.broadcast %221 : vector<8x8x1xf32> to vector<8x8x16xf32>
    %223 = arith.divf %219, %222 : vector<8x8x16xf32>
    "tpu.trace_start"() <{level = 10 : i32, message = "bqk,bkd->bqd"}> : () -> ()
    %cst_24 = arith.constant dense<0.000000e+00> : vector<8x8x8xf32>
    %224 = tpu.matmul %223, %211, %cst_24 {dimension_numbers = #tpu.dot_dimension_numbers<[2], [1], [1], [2], [0, 0, 0, 1, 1, 2], [0], [0]>} : vector<8x8x16xf32>, vector<8x16x8xf32>, vector<8x8x8xf32> -> vector<8x8x8xf32>
    "tpu.trace_stop"() : () -> ()
    %225 = vector.extract_strided_slice %224 {offsets = [0, 0, 0], sizes = [1, 8, 8], strides = [1, 1, 1]} : vector<8x8x8xf32> to vector<1x8x8xf32>
    %226 = vector.shape_cast %225 : vector<1x8x8xf32> to vector<8x8xf32>
    %227 = vector.extract_strided_slice %224 {offsets = [1, 0, 0], sizes = [1, 8, 8], strides = [1, 1, 1]} : vector<8x8x8xf32> to vector<1x8x8xf32>
    %228 = vector.shape_cast %227 : vector<1x8x8xf32> to vector<8x8xf32>
    %229 = vector.extract_strided_slice %224 {offsets = [2, 0, 0], sizes = [1, 8, 8], strides = [1, 1, 1]} : vector<8x8x8xf32> to vector<1x8x8xf32>
    %230 = vector.shape_cast %229 : vector<1x8x8xf32> to vector<8x8xf32>
    %231 = vector.extract_strided_slice %224 {offsets = [3, 0, 0], sizes = [1, 8, 8], strides = [1, 1, 1]} : vector<8x8x8xf32> to vector<1x8x8xf32>
    %232 = vector.shape_cast %231 : vector<1x8x8xf32> to vector<8x8xf32>
    %233 = tpu.concatenate %226, %228, %230, %232 in 1 : vector<8x8xf32>, vector<8x8xf32>, vector<8x8xf32>, vector<8x8xf32> -> vector<8x32xf32>
    %234 = vector.extract_strided_slice %224 {offsets = [4, 0, 0], sizes = [1, 8, 8], strides = [1, 1, 1]} : vector<8x8x8xf32> to vector<1x8x8xf32>
    %235 = vector.shape_cast %234 : vector<1x8x8xf32> to vector<8x8xf32>
    %236 = vector.extract_strided_slice %224 {offsets = [5, 0, 0], sizes = [1, 8, 8], strides = [1, 1, 1]} : vector<8x8x8xf32> to vector<1x8x8xf32>
    %237 = vector.shape_cast %236 : vector<1x8x8xf32> to vector<8x8xf32>
    %238 = vector.extract_strided_slice %224 {offsets = [6, 0, 0], sizes = [1, 8, 8], strides = [1, 1, 1]} : vector<8x8x8xf32> to vector<1x8x8xf32>
    %239 = vector.shape_cast %238 : vector<1x8x8xf32> to vector<8x8xf32>
    %240 = vector.extract_strided_slice %224 {offsets = [7, 0, 0], sizes = [1, 8, 8], strides = [1, 1, 1]} : vector<8x8x8xf32> to vector<1x8x8xf32>
    %241 = vector.shape_cast %240 : vector<1x8x8xf32> to vector<8x8xf32>
    %242 = tpu.concatenate %235, %237, %239, %241 in 1 : vector<8x8xf32>, vector<8x8xf32>, vector<8x8xf32>, vector<8x8xf32> -> vector<8x32xf32>
    %243 = tpu.concatenate %233, %242 in 0 : vector<8x32xf32>, vector<8x32xf32> -> vector<16x32xf32>
    %cst_25 = arith.constant dense<0.000000e+00> : vector<16x32xf32>
    %244 = tpu.matmul %243, %8, %cst_25 {dimension_numbers = #tpu.dot_dimension_numbers<[1], [0], [0], [1], [0, 0, 1, 1], [], []>} : vector<16x32xf32>, vector<32x32xf32>, vector<16x32xf32> -> vector<16x32xf32>
    %245 = vector.broadcast %17 : vector<1x32xf32> to vector<16x32xf32>
    %246 = arith.addf %244, %245 : vector<16x32xf32>
    %247 = arith.addf %146, %246 : vector<16x32xf32>
    %cst_26 = arith.constant dense<0.000000e+00> : vector<16xf32>
    %248 = vector.multi_reduction <add>, %247, %cst_26 [1] : vector<16x32xf32> to vector<16xf32>
    %249 = vector.shape_cast %248 : vector<16xf32> to vector<16x1xf32>
    %cst_27 = arith.constant 3.200000e+01 : f32
    %250 = vector.broadcast %cst_27 : f32 to vector<16x1xf32>
    %251 = arith.divf %249, %250 : vector<16x1xf32>
    %252 = vector.broadcast %251 : vector<16x1xf32> to vector<16x32xf32>
    %253 = arith.subf %247, %252 : vector<16x32xf32>
    %254 = arith.mulf %253, %253 : vector<16x32xf32>
    %cst_28 = arith.constant dense<0.000000e+00> : vector<16xf32>
    %255 = vector.multi_reduction <add>, %254, %cst_28 [1] : vector<16x32xf32> to vector<16xf32>
    %256 = vector.shape_cast %255 : vector<16xf32> to vector<16x1xf32>
    %cst_29 = arith.constant 3.200000e+01 : f32
    %257 = vector.broadcast %cst_29 : f32 to vector<16x1xf32>
    %258 = arith.divf %256, %257 : vector<16x1xf32>
    %259 = vector.broadcast %251 : vector<16x1xf32> to vector<16x32xf32>
    %260 = arith.subf %247, %259 : vector<16x32xf32>
    %cst_30 = arith.constant 9.99999974E-6 : f32
    %261 = vector.broadcast %cst_30 : f32 to vector<16x1xf32>
    %262 = arith.addf %258, %261 : vector<16x1xf32>
    %263 = math.rsqrt %262 : vector<16x1xf32>
    %264 = vector.broadcast %263 : vector<16x1xf32> to vector<16x32xf32>
    %265 = arith.mulf %260, %264 : vector<16x32xf32>
    %266 = vector.broadcast %22 : vector<1x32xf32> to vector<16x32xf32>
    %267 = arith.mulf %265, %266 : vector<16x32xf32>
    %268 = vector.broadcast %23 : vector<1x32xf32> to vector<16x32xf32>
    %269 = arith.addf %267, %268 : vector<16x32xf32>
    %cst_31 = arith.constant dense<0.000000e+00> : vector<16x64xf32>
    %270 = tpu.matmul %269, %9, %cst_31 {dimension_numbers = #tpu.dot_dimension_numbers<[1], [0], [0], [1], [0, 0, 1, 1], [], []>} : vector<16x32xf32>, vector<32x64xf32>, vector<16x64xf32> -> vector<16x64xf32>
    %271 = vector.broadcast %18 : vector<1x64xf32> to vector<16x64xf32>
    %272 = arith.addf %270, %271 : vector<16x64xf32>
    %cst_32 = arith.constant 0.000000e+00 : f32
    %273 = vector.broadcast %cst_32 : f32 to vector<16x64xf32>
    %274 = arith.maximumf %272, %273 : vector<16x64xf32>
    %cst_33 = arith.constant dense<0.000000e+00> : vector<16x32xf32>
    %275 = tpu.matmul %274, %12, %cst_33 {dimension_numbers = #tpu.dot_dimension_numbers<[1], [0], [0], [1], [0, 0, 1, 1], [], []>} : vector<16x64xf32>, vector<64x32xf32>, vector<16x32xf32> -> vector<16x32xf32>
    %276 = vector.broadcast %19 : vector<1x32xf32> to vector<16x32xf32>
    %277 = arith.addf %275, %276 : vector<16x32xf32>
    %278 = arith.addf %269, %277 : vector<16x32xf32>
    %cst_34 = arith.constant dense<0.000000e+00> : vector<16xf32>
    %279 = vector.multi_reduction <add>, %278, %cst_34 [1] : vector<16x32xf32> to vector<16xf32>
    %280 = vector.shape_cast %279 : vector<16xf32> to vector<16x1xf32>
    %cst_35 = arith.constant 3.200000e+01 : f32
    %281 = vector.broadcast %cst_35 : f32 to vector<16x1xf32>
    %282 = arith.divf %280, %281 : vector<16x1xf32>
    %283 = vector.broadcast %282 : vector<16x1xf32> to vector<16x32xf32>
    %284 = arith.subf %278, %283 : vector<16x32xf32>
    %285 = arith.mulf %284, %284 : vector<16x32xf32>
    %cst_36 = arith.constant dense<0.000000e+00> : vector<16xf32>
    %286 = vector.multi_reduction <add>, %285, %cst_36 [1] : vector<16x32xf32> to vector<16xf32>
    %287 = vector.shape_cast %286 : vector<16xf32> to vector<16x1xf32>
    %cst_37 = arith.constant 3.200000e+01 : f32
    %288 = vector.broadcast %cst_37 : f32 to vector<16x1xf32>
    %289 = arith.divf %287, %288 : vector<16x1xf32>
    %290 = vector.broadcast %282 : vector<16x1xf32> to vector<16x32xf32>
    %291 = arith.subf %278, %290 : vector<16x32xf32>
    %cst_38 = arith.constant 9.99999974E-6 : f32
    %292 = vector.broadcast %cst_38 : f32 to vector<16x1xf32>
    %293 = arith.addf %289, %292 : vector<16x1xf32>
    %294 = math.rsqrt %293 : vector<16x1xf32>
    %295 = vector.broadcast %294 : vector<16x1xf32> to vector<16x32xf32>
    %296 = arith.mulf %291, %295 : vector<16x32xf32>
    %297 = vector.broadcast %24 : vector<1x32xf32> to vector<16x32xf32>
    %298 = arith.mulf %296, %297 : vector<16x32xf32>
    %299 = vector.broadcast %25 : vector<1x32xf32> to vector<16x32xf32>
    %300 = arith.addf %298, %299 : vector<16x32xf32>
    %301 = vector.extract_strided_slice %300 {offsets = [0, 0], sizes = [1, 32], strides = [1, 1]} : vector<16x32xf32> to vector<1x32xf32>
    %302 = vector.extract_strided_slice %300 {offsets = [1, 0], sizes = [1, 32], strides = [1, 1]} : vector<16x32xf32> to vector<1x32xf32>
    %303 = vector.extract_strided_slice %300 {offsets = [2, 0], sizes = [1, 32], strides = [1, 1]} : vector<16x32xf32> to vector<1x32xf32>
    %304 = vector.extract_strided_slice %300 {offsets = [3, 0], sizes = [1, 32], strides = [1, 1]} : vector<16x32xf32> to vector<1x32xf32>
    %305 = tpu.concatenate %301, %302, %303, %304 in 1 : vector<1x32xf32>, vector<1x32xf32>, vector<1x32xf32>, vector<1x32xf32> -> vector<1x128xf32>
    %306 = vector.extract_strided_slice %300 {offsets = [4, 0], sizes = [1, 32], strides = [1, 1]} : vector<16x32xf32> to vector<1x32xf32>
    %307 = vector.extract_strided_slice %300 {offsets = [5, 0], sizes = [1, 32], strides = [1, 1]} : vector<16x32xf32> to vector<1x32xf32>
    %308 = vector.extract_strided_slice %300 {offsets = [6, 0], sizes = [1, 32], strides = [1, 1]} : vector<16x32xf32> to vector<1x32xf32>
    %309 = vector.extract_strided_slice %300 {offsets = [7, 0], sizes = [1, 32], strides = [1, 1]} : vector<16x32xf32> to vector<1x32xf32>
    %310 = tpu.concatenate %306, %307, %308, %309 in 1 : vector<1x32xf32>, vector<1x32xf32>, vector<1x32xf32>, vector<1x32xf32> -> vector<1x128xf32>
    %311 = vector.extract_strided_slice %300 {offsets = [8, 0], sizes = [1, 32], strides = [1, 1]} : vector<16x32xf32> to vector<1x32xf32>
    %312 = vector.extract_strided_slice %300 {offsets = [9, 0], sizes = [1, 32], strides = [1, 1]} : vector<16x32xf32> to vector<1x32xf32>
    %313 = vector.extract_strided_slice %300 {offsets = [10, 0], sizes = [1, 32], strides = [1, 1]} : vector<16x32xf32> to vector<1x32xf32>
    %314 = vector.extract_strided_slice %300 {offsets = [11, 0], sizes = [1, 32], strides = [1, 1]} : vector<16x32xf32> to vector<1x32xf32>
    %315 = tpu.concatenate %311, %312, %313, %314 in 1 : vector<1x32xf32>, vector<1x32xf32>, vector<1x32xf32>, vector<1x32xf32> -> vector<1x128xf32>
    %316 = vector.extract_strided_slice %300 {offsets = [12, 0], sizes = [1, 32], strides = [1, 1]} : vector<16x32xf32> to vector<1x32xf32>
    %317 = vector.extract_strided_slice %300 {offsets = [13, 0], sizes = [1, 32], strides = [1, 1]} : vector<16x32xf32> to vector<1x32xf32>
    %318 = vector.extract_strided_slice %300 {offsets = [14, 0], sizes = [1, 32], strides = [1, 1]} : vector<16x32xf32> to vector<1x32xf32>
    %319 = vector.extract_strided_slice %300 {offsets = [15, 0], sizes = [1, 32], strides = [1, 1]} : vector<16x32xf32> to vector<1x32xf32>
    %320 = tpu.concatenate %316, %317, %318, %319 in 1 : vector<1x32xf32>, vector<1x32xf32>, vector<1x32xf32>, vector<1x32xf32> -> vector<1x128xf32>
    %321 = tpu.concatenate %305, %310, %315, %320 in 0 : vector<1x128xf32>, vector<1x128xf32>, vector<1x128xf32>, vector<1x128xf32> -> vector<4x128xf32>
    %c0_39 = arith.constant 0 : index
    %c0_40 = arith.constant 0 : index
    %322 = vector.load %arg5[%c0_39, %c0_40] : memref<4x128xf32, #tpu.memory_space<vmem>>, vector<4x128xf32>
    tpu.vector_store %arg5[%c0_39, %c0_40], %321 {strides = array<i32>} : memref<4x128xf32, #tpu.memory_space<vmem>>, vector<4x128xf32>,
    return
  }
  func.func @transform_0(%arg0: i32) -> (i32, i32) {
    %c0_i32 = arith.constant 0 : i32
    %c0_i32_0 = arith.constant 0 : i32
    %c0_i32_1 = arith.constant 0 : i32
    return %c0_i32, %c0_i32_0 : i32, i32
  }
  func.func @transform_1(%arg0: i32) -> (i32, i32) {
    %c0_i32 = arith.constant 0 : i32
    %c0_i32_0 = arith.constant 0 : i32
    %c0_i32_1 = arith.constant 0 : i32
    return %c0_i32, %c0_i32_0 : i32, i32
  }
  func.func @transform_2(%arg0: i32) -> (i32, i32) {
    %c0_i32 = arith.constant 0 : i32
    %c0_i32_0 = arith.constant 0 : i32
    %c0_i32_1 = arith.constant 0 : i32
    return %c0_i32, %c0_i32_0 : i32, i32
  }
  func.func @transform_3(%arg0: i32) -> (i32, i32) {
    %c0_i32 = arith.constant 0 : i32
    %c0_i32_0 = arith.constant 0 : i32
    %c0_i32_1 = arith.constant 0 : i32
    return %c0_i32, %c0_i32_0 : i32, i32
  }
  func.func @transform_4(%arg0: i32) -> (i32, i32) {
    %c0_i32 = arith.constant 0 : i32
    %c0_i32_0 = arith.constant 0 : i32
    %c0_i32_1 = arith.constant 0 : i32
    return %c0_i32, %c0_i32_0 : i32, i32
  }
}

</mosaic_0001>

<bundles_post_ra>
// kernel: transformer_decoder_layer.1
= control target key start
LH: loop header
LB: loop body
LE: loop exit
PB: predicated region body
PF: predicated region fallthrough
CT: control target
= control target key end

     0   :  { %vm52_vm0 = vcmask 261120   ;;  %v48_v6 = vlaneseq  ;;  %v4264_v12 = vmov 0.0   ;;  %s4266_s29 = smov 120   ;;  %vm4267_vm1 = vmmov 0   ;;  %s4268_s30 = smov 112   ;;  %s4979_s2 = inlined_call_operand.vmem [shape: f32[32,384], index: 2, kind: input, shape index: {}]   ;;  %s4980_s0 = inlined_call_operand.vmem [shape: f32[16,32], index: 0, kind: input, shape index: {}]   ;;  %s4981_s3 = inlined_call_operand.vmem [shape: f32[8,128], index: 3, kind: input, shape index: {}]   ;;  %s4982_s1 = inlined_call_operand.vmem [shape: f32[32,32], index: 1, kind: input, shape index: {}]   ;;  %s4983_s4 = inlined_call_operand.vmem [shape: f32[4,128], index: 4, kind: output, shape index: {}]  }
   0x1   :  { %v4303_v0 = vld [vmem:[%s4979_s2 + $0x48] sm:$0xff]  ;;  %v4308_v1 = vld [vmem:[%s4979_s2 + $0x30] sm:$0xff]  ;;  %v4314_v2 = vld [vmem:[%s4980_s0] sm:$0xff]  ;;  %3917 = vmatprep.subr.mxu0 %v4264_v12  ;;  %3919 = vmatprep.mubr.msk.f32.mxu0 %vm4267_vm1, %v4264_v12  ;;  %s4269_s5 = smov 96   ;;  %vm164_vm2 = vcmask 64512   ;;  %s4270_s6 = smov 64  }
   0x2   :  { %3896 = vmatprep.subr.mxu1 %v4303_v0  ;;  %v4320_v3 = vld [vmem:[%s4979_s2 + $0x18] sm:$0xff]  ;;  %3904 = vmatprep.mubr.msk.f32.mxu1 %vm52_vm0, %v4314_v2  ;;  %v4329_v4 = vld [vmem:[%s4979_s2] sm:$0xff]  ;;  %v4336_v5 = vld [vmem:[%s4980_s0 + $0x8] sm:$0xff]  ;;  %v4342_v7 = vshrl.u32 %v48_v6, 7  ;;  %s4265_s0 = smov 104   ;;  %s4271_s13 = smov 8  }
   0x3   :  { %3897 = vmatpush3.msra.mxu1 %v4303_v0  ;;  %v4348_v9 = vld [vmem:[%s4981_s3] sm:$0xff]  ;;  %s4272_s14 = smov 16   ;;  %s4273_s15 = smov 24   ;;  %vm1488_vm3 = vcmask 130048   ;;  %vm1490_vm4 = vcmask 195584   ;;  %vm3522_vm5 = vcmask 523264  }
   0x4   :  { %3898 = vmatprep.subr.mxu1 %v4308_v1  ;;  %v50_v8 = vsub.s32 0, %v4342_v7  ;;  %s4274_s18 = smov 32   ;;  %vm3659_vm6 = vcmask 785408   ;;  %vm3685_vm7 = vcmask 1040384   ;;  %vm3687_vm8 = vcmask 1041408  }
   0x5   :  { %3899 = vmatpush3.msra.mxu1 %v4308_v1  ;;  %vm3689_vm9 = vcmask 1042432  }
   0x6   :  { %3900 = vmatprep.subr.mxu1 %v4320_v3  ;;  %v4351_v11 = vrot.slane %v4348_v9, %v50_v8 }
   0x7   :  { %3901 = vmatpush3.msra.mxu1 %v4320_v3 }
   0x8   :  { %3902 = vmatprep.subr.mxu1 %v4329_v4 }
   0x9   :  { %3903 = vmatpush3.msra.mxu1 %v4329_v4 }
   0xa   :  { %3905 = vmatmul.mubr.msk.f32.vlgmr.msra.gmra.mxu1 %vm52_vm0, %v4336_v5  ;;  %3907 = vmatprep.subr.mxu1 %v4264_v12 }
   0xb   :  { %3909 = vmatprep.mubr.msk.f32.mxu1 %vm4267_vm1, %v4264_v12 }
  0xca   :  { %v3906_v10 = vpop.f32.mrf.mxu1 }
  0xcb   :  { %v4367_v15 = vadd.f32 %v3906_v10, %v4351_v11 }
  0xcc   :  { %v125_v13 = vpop.f32.mrf.mxu1 }
  0xcd   :  { %v4356_v14 = vadd.f32 %v125_v13, %v4351_v11  ;;  %v158_v33 = vmul.f32 0.35355338, %v4367_v15 }
  0xcf   :  { %141 = vrot.lane.b32.xlu1 %v4356_v14, %s4265_s0  ;;  %135 = vrot.lane.b32.xlu0 %v4356_v14, %s4266_s29  ;;  %v154_v23 = vmul.f32 0.35355338, %v4356_v14 }
  0xd3   :  { %145 = vrot.lane.b32.xlu1 %v4367_v15, %s4266_s29  ;;  %138 = vrot.lane.b32.xlu0 %v4356_v14, %s4268_s30 }
  0xd7   :  { %151 = vrot.lane.b32.xlu1 %v4367_v15, %s4265_s0  ;;  %148 = vrot.lane.b32.xlu0 %v4367_v15, %s4268_s30 }
  0xdb   :  { %162 = vrot.lane.b32.xlu0 %v4356_v14, %s4269_s5 }
 0x141   :  { %v4379_v16 = vpop.permute.xlu1 %141  ;;  %v4381_v17 = vpop.permute.xlu0 %135 }
 0x142   :  { %240 = vrot.lane.b32.xlu1 %v4381_v17, %s4269_s5  ;;  %v155_v25 = vmul.f32 0.35355338, %v4381_v17  ;;  %v157_v28 = vmul.f32 0.35355338, %v4379_v16 }
 0x145   :  { %v4385_v18 = vpop.permute.xlu0 %138  ;;  %v4391_v19 = vpop.permute.xlu1 %145 }
 0x146   :  { %394 = vrot.lane.b32.xlu1 %v4379_v16, %s4269_s5  ;;  %317 = vrot.lane.b32.xlu0 %v4385_v18, %s4269_s5  ;;  %v156_v29 = vmul.f32 0.35355338, %v4385_v18  ;;  %v159_v32 = vmul.f32 0.35355338, %v4391_v19 }
 0x149   :  { %v4393_v20 = vpop.permute.xlu0 %148  ;;  %v4399_v21 = vpop.permute.xlu1 %151 }
 0x14a   :  { %548 = vrot.lane.b32.xlu1 %v4391_v19, %s4269_s5  ;;  %471 = vrot.lane.b32.xlu0 %v4367_v15, %s4269_s5  ;;  %v161_v36 = vmul.f32 0.35355338, %v4399_v21  ;;  %v160_v37 = vmul.f32 0.35355338, %v4393_v20 }
 0x14d   :  { %v163_v22 = vpop.permute.xlu0 %162 }
 0x14e   :  { %702 = vrot.lane.b32.xlu1 %v4399_v21, %s4269_s5  ;;  %625 = vrot.lane.b32.xlu0 %v4393_v20, %s4269_s5 }
 0x14f   :  { %3908 = vmatpush3.xpose.msk.msra.mxu1 %vm164_vm2, %v163_v22 }
 0x150   :  { %3912 = vmatprep.subr.mxu1 %v4264_v12 }
 0x152   :  { %3910 = vmatmul.mubr.msk.f32.vlgmr.msra.gmra.mxu1 %vm164_vm2, %v154_v23 }
 0x153   :  { %3914 = vmatprep.mubr.msk.f32.mxu1 %vm4267_vm1, %v4264_v12 }
 0x1b4   :  { %v241_v24 = vpop.permute.xlu1 %240 }
 0x1b5   :  { %3913 = vmatpush3.xpose.msk.msra.mxu1 %vm164_vm2, %v241_v24 }
 0x1b6   :  { %3922 = vmatprep.subr.mxu1 %v4264_v12 }
 0x1b8   :  { %v395_v26 = vpop.permute.xlu1 %394  ;;  %v318_v27 = vpop.permute.xlu0 %317  ;;  %3915 = vmatmul.mubr.msk.f32.vlgmr.msra.gmra.mxu1 %vm164_vm2, %v155_v25 }
 0x1b9   :  { %3918 = vmatpush3.xpose.msk.msra.mxu0 %vm164_vm2, %v318_v27  ;;  %3923 = vmatpush3.xpose.msk.msra.mxu1 %vm164_vm2, %v395_v26 }
 0x1ba   :  { %3924 = vmatprep.mubr.msk.f32.mxu1 %vm4267_vm1, %v4264_v12  ;;  %3927 = vmatprep.subr.mxu0 %v4264_v12 }
 0x1bb   :  { %3932 = vmatprep.subr.mxu1 %v4264_v12 }
 0x1bc   :  { %v549_v30 = vpop.permute.xlu1 %548  ;;  %3920 = vmatmul.mubr.msk.f32.vlgmr.msra.gmra.mxu0 %vm164_vm2, %v156_v29  ;;  %v472_v31 = vpop.permute.xlu0 %471  ;;  %3925 = vmatmul.mubr.msk.f32.vlgmr.msra.gmra.mxu1 %vm164_vm2, %v157_v28 }
 0x1bd   :  { %3928 = vmatpush3.xpose.msk.msra.mxu0 %vm164_vm2, %v472_v31  ;;  %3933 = vmatpush3.xpose.msk.msra.mxu1 %vm164_vm2, %v549_v30 }
 0x1be   :  { %3929 = vmatprep.mubr.msk.f32.mxu0 %vm4267_vm1, %v4264_v12  ;;  %3934 = vmatprep.mubr.msk.f32.mxu1 %vm4267_vm1, %v4264_v12 }
 0x1bf   :  { %3937 = vmatprep.subr.mxu0 %v4264_v12  ;;  %3942 = vmatprep.subr.mxu1 %v4264_v12 }
 0x1c0   :  { %v703_v34 = vpop.permute.xlu1 %702  ;;  %3930 = vmatmul.mubr.msk.f32.vlgmr.msra.gmra.mxu0 %vm164_vm2, %v158_v33  ;;  %v626_v35 = vpop.permute.xlu0 %625  ;;  %3935 = vmatmul.mubr.msk.f32.vlgmr.msra.gmra.mxu1 %vm164_vm2, %v159_v32 }
 0x1c1   :  { %3938 = vmatpush3.xpose.msk.msra.mxu0 %vm164_vm2, %v626_v35  ;;  %3943 = vmatpush3.xpose.msk.msra.mxu1 %vm164_vm2, %v703_v34 }
 0x1c2   :  { %3939 = vmatprep.mubr.msk.f32.mxu0 %vm4267_vm1, %v4264_v12  ;;  %3944 = vmatprep.mubr.msk.f32.mxu1 %vm4267_vm1, %v4264_v12 }
 0x1c3   :  { %3947 = vmatprep.subr.mxu0 %v4264_v12  ;;  %3952 = vmatprep.subr.mxu1 %v4264_v12 }
 0x1c4   :  { %3940 = vmatmul.mubr.msk.f32.vlgmr.msra.gmra.mxu0 %vm164_vm2, %v160_v37  ;;  %3945 = vmatmul.mubr.msk.f32.vlgmr.msra.gmra.mxu1 %vm164_vm2, %v161_v36 }
 0x1c5   :  { %3949 = vmatprep.mubr.msk.f32.mxu0 %vm4267_vm1, %v4264_v12  ;;  %3954 = vmatprep.mubr.msk.f32.mxu1 %vm4267_vm1, %v4264_v12 }
 0x212   :  { %v236_v38 = vpop.f32.mrf.mxu1 }
 0x213   :  { %v779_v39 = vsel %vm164_vm2, %v236_v38, -inf }
 0x214   :  { %780 = vmax.xlane.f32.xlu0 %v779_v39  ;;  %v3911_v40 = vpop.f32.mrf.mxu1 }
 0x278   :  { %v313_v41 = vpop.f32.mrf.mxu1 }
 0x279   :  { %v782_v42 = vsel %vm164_vm2, %v313_v41, -inf }
 0x27a   :  { %783 = vmax.xlane.f32.xlu1 %v782_v42  ;;  %v3916_v43 = vpop.f32.mrf.mxu1 }
 0x27c   :  { %v390_v44 = vpop.f32.mrf.mxu0  ;;  %v467_v45 = vpop.f32.mrf.mxu1 }
 0x27d   :  { %v785_v46 = vsel %vm164_vm2, %v390_v44, -inf  ;;  %v788_v52 = vsel %vm164_vm2, %v467_v45, -inf }
 0x27e   :  { %v3921_v47 = vpop.f32.mrf.mxu0  ;;  %786 = vmax.xlane.f32.xlu0 %v785_v46  ;;  %v3926_v48 = vpop.f32.mrf.mxu1 }
 0x280   :  { %v544_v49 = vpop.f32.mrf.mxu0  ;;  %v621_v50 = vpop.f32.mrf.mxu1 }
 0x281   :  { %v791_v51 = vsel %vm164_vm2, %v544_v49, -inf  ;;  %v794_v58 = vsel %vm164_vm2, %v621_v50, -inf }
 0x282   :  { %v3931_v53 = vpop.f32.mrf.mxu0  ;;  %792 = vmax.xlane.f32.xlu1 %v791_v51  ;;  %789 = vmax.xlane.f32.xlu0 %v788_v52  ;;  %v3936_v54 = vpop.f32.mrf.mxu1 }
 0x284   :  { %v698_v55 = vpop.f32.mrf.mxu0  ;;  %v775_v56 = vpop.f32.mrf.mxu1 }
 0x285   :  { %v797_v57 = vsel %vm164_vm2, %v698_v55, -inf  ;;  %v800_v61 = vsel %vm164_vm2, %v775_v56, -inf }
 0x286   :  { %v3941_v59 = vpop.f32.mrf.mxu0  ;;  %798 = vmax.xlane.f32.xlu1 %v797_v57  ;;  %795 = vmax.xlane.f32.xlu0 %v794_v58  ;;  %v3946_v60 = vpop.f32.mrf.mxu1 }
 0x28a   :  { %801 = vmax.xlane.f32.xlu0 %v800_v61 }
 0x297   :  { %867 = vrot.lane.b32.xlu1 %v4356_v14, %s4270_s6 }
 0x29b   :  { %1019 = vrot.lane.b32.xlu1 %v4385_v18, %s4270_s6 }
 0x29d   :  { %v781_v62 = vpop.xlane.xlu0 %780 }
 0x29e   :  { %v803_v63 = vsub.f32 %v236_v38, %v781_v62 }
 0x29f   :  { %1095 = vrot.lane.b32.xlu1 %v4379_v16, %s4270_s6 }
 0x2a0   :  { %943 = vrot.lane.b32.xlu0 %v4381_v17, %s4270_s6  ;;  %v811_v6 = vmul.f32 1.442695, %v803_v63 }
 0x2a2   :  { %4187 = vpow2.f32 %v811_v6 }
 0x2a3   :  { %1247 = vrot.lane.b32.xlu1 %v4391_v19, %s4270_s6 }
 0x2a4   :  { %1171 = vrot.lane.b32.xlu0 %v4367_v15, %s4270_s6 }
 0x2af   :  { %v4473_v8 = vpop.eup %4187 }
 0x2b0   :  { %v827_v10 = vsel %vm164_vm2, %v4473_v8, 0.0 }
 0x2c7   :  { %828 = vadd.xlane.f32.xlu1 %v827_v10 }
 0x303   :  { %v784_v13 = vpop.xlane.xlu1 %783 }
 0x304   :  { %v804_v14 = vsub.f32 %v313_v41, %v784_v13 }
 0x306   :  { %v813_v16 = vmul.f32 1.442695, %v804_v14 }
 0x307   :  { %v787_v17 = vpop.xlane.xlu0 %786 }
 0x308   :  { %4189 = vpow2.f32 %v813_v16  ;;  %v805_v18 = vsub.f32 %v390_v44, %v787_v17 }
 0x30a   :  { %v815_v19 = vmul.f32 1.442695, %v805_v18 }
 0x30b   :  { %v793_v22 = vpop.xlane.xlu1 %792  ;;  %v790_v23 = vpop.xlane.xlu0 %789 }
 0x30c   :  { %4191 = vpow2.f32 %v815_v19  ;;  %v807_v15 = vsub.f32 %v544_v49, %v793_v22  ;;  %v806_v24 = vsub.f32 %v467_v45, %v790_v23 }
 0x30e   :  { %v819_v25 = vmul.f32 1.442695, %v807_v15  ;;  %v817_v26 = vmul.f32 1.442695, %v806_v24 }
 0x30f   :  { %v799_v27 = vpop.xlane.xlu1 %798  ;;  %v796_v28 = vpop.xlane.xlu0 %795 }
 0x310   :  { %4193 = vpow2.f32 %v819_v25  ;;  %v809_v29 = vsub.f32 %v698_v55, %v799_v27  ;;  %v808_v30 = vsub.f32 %v621_v50, %v796_v28 }
 0x311   :  { %4195 = vpow2.f32 %v817_v26 }
 0x312   :  { %v823_v31 = vmul.f32 1.442695, %v809_v29  ;;  %v821_v32 = vmul.f32 1.442695, %v808_v30  ;;  %v4537_v29 = vld [vmem:[%s4979_s2 + $0x38] sm:$0xff]  ;;  %v4544_v30 = vld [vmem:[%s4979_s2 + $0x20] sm:$0xff] }
 0x313   :  { %v868_v33 = vpop.permute.xlu1 %867  ;;  %v802_v34 = vpop.xlane.xlu0 %801 }
 0x314   :  { %4197 = vpow2.f32 %v823_v31  ;;  %v810_v35 = vsub.f32 %v775_v56, %v802_v34  ;;  %3948 = vmatpush3.msra.mxu0 %v868_v33 }
 0x315   :  { %v4190_v36 = vpop.eup %4189  ;;  %4199 = vpow2.f32 %v821_v32  ;;  %3957 = vmatprep.subr.mxu0 %v4264_v12 }
 0x316   :  { %v825_v37 = vmul.f32 1.442695, %v810_v35  ;;  %v830_v38 = vsel %vm164_vm2, %v4190_v36, 0.0 }
 0x317   :  { %831 = vadd.xlane.f32.xlu0 %v830_v38  ;;  %v944_v39 = vpop.permute.xlu0 %943  ;;  %v1020_v52 = vpop.permute.xlu1 %1019 }
 0x318   :  { %4201 = vpow2.f32 %v825_v37  ;;  %3953 = vmatpush3.msra.mxu1 %v944_v39 }
 0x319   :  { %v4192_v40 = vpop.eup %4191  ;;  %3962 = vmatprep.subr.mxu1 %v4264_v12 }
 0x31a   :  { %v833_v41 = vsel %vm164_vm2, %v4192_v40, 0.0 }
 0x31b   :  { %834 = vadd.xlane.f32.xlu1 %v833_v41  ;;  %v1096_v53 = vpop.permute.xlu1 %1095 }
 0x31d   :  { %v4194_v42 = vpop.eup %4193 }
 0x31e   :  { %v4196_v43 = vpop.eup %4195  ;;  %v839_v44 = vsel %vm164_vm2, %v4194_v42, 0.0 }
 0x31f   :  { %840 = vadd.xlane.f32.xlu1 %v839_v44  ;;  %v836_v45 = vsel %vm164_vm2, %v4196_v43, 0.0  ;;  %v1248_v54 = vpop.permute.xlu1 %1247 }
 0x320   :  { %837 = vadd.xlane.f32.xlu0 %v836_v45  ;;  %v4555_v45 = vld [vmem:[%s4979_s2 + $0x8] sm:$0xff] }
 0x321   :  { %v4483_v46 = vpop.eup %4197 }
 0x322   :  { %v4485_v47 = vpop.eup %4199  ;;  %v845_v48 = vsel %vm164_vm2, %v4483_v46, 0.0 }
 0x323   :  { %846 = vadd.xlane.f32.xlu1 %v845_v48  ;;  %v842_v49 = vsel %vm164_vm2, %v4485_v47, 0.0 }
 0x324   :  { %843 = vadd.xlane.f32.xlu0 %v842_v49 }
 0x325   :  { %v4491_v50 = vpop.eup %4201 }
 0x326   :  { %v848_v51 = vsel %vm164_vm2, %v4491_v50, 0.0 }
 0x328   :  { %849 = vadd.xlane.f32.xlu0 %v848_v51 }
 0x334   :  { %1399 = vrot.lane.b32.xlu1 %v4399_v21, %s4270_s6  ;;  %v1172_v21 = vpop.permute.xlu0 %1171 }
 0x338   :  { %1519 = vrot.lane.b32.xlu1 %v4537_v29, %s4270_s6 }
 0x33c   :  { %1517 = vrot.lane.b32.xlu1 %v4544_v30, %s4270_s6 }
 0x33e   :  { %1323 = vrot.lane.b32.xlu0 %v4393_v20, %s4270_s6  ;;  %v4507_v20 = vld [vmem:[%s4979_s2 + $0x50] sm:$0xff] }
 0x342   :  { %1521 = vrot.lane.b32.xlu0 %v4507_v20, %s4270_s6 }
 0x350   :  { %v829_v55 = vpop.xlane.xlu1 %828 }
 0x351   :  { %4203 = vrcp.f32 %v829_v55 }
 0x35e   :  { %v4204_v56 = vpop.eup %4203 }
 0x35f   :  { %v852_v57 = vmul.f32 %v4204_v56, %v4473_v8 }
 0x361   :  { %3950 = vmatmul.mubr.msk.f32.vlgmr.msra.gmra.mxu0 %vm164_vm2, %v852_v57 }
 0x362   :  { %3958 = vmatpush3.msra.mxu0 %v1020_v52  ;;  %3959 = vmatprep.mubr.msk.f32.mxu0 %vm4267_vm1, %v4264_v12 }
 0x363   :  { %3967 = vmatprep.subr.mxu0 %v4264_v12 }
 0x3a0   :  { %v832_v58 = vpop.xlane.xlu0 %831 }
 0x3a1   :  { %4205 = vrcp.f32 %v832_v58 }
 0x3a4   :  { %v835_v59 = vpop.xlane.xlu1 %834 }
 0x3a5   :  { %4207 = vrcp.f32 %v835_v59 }
 0x3a8   :  { %v841_v60 = vpop.xlane.xlu1 %840 }
 0x3a9   :  { %4209 = vrcp.f32 %v841_v60  ;;  %v838_v61 = vpop.xlane.xlu0 %837 }
 0x3aa   :  { %4211 = vrcp.f32 %v838_v61 }
 0x3ac   :  { %v847_v62 = vpop.xlane.xlu1 %846 }
 0x3ad   :  { %4213 = vrcp.f32 %v847_v62  ;;  %v844_v63 = vpop.xlane.xlu0 %843 }
 0x3ae   :  { %v4206_v6 = vpop.eup %4205  ;;  %4215 = vrcp.f32 %v844_v63 }
 0x3af   :  { %v854_v8 = vmul.f32 %v4206_v6, %v4190_v36 }
 0x3b0   :  { %v1400_v26 = vpop.permute.xlu1 %1399 }
 0x3b1   :  { %v850_v10 = vpop.xlane.xlu0 %849  ;;  %3955 = vmatmul.mubr.msk.f32.vlgmr.msra.gmra.mxu1 %vm164_vm2, %v854_v8 }
 0x3b2   :  { %v4208_v13 = vpop.eup %4207  ;;  %4217 = vrcp.f32 %v850_v10  ;;  %3963 = vmatpush3.msra.mxu1 %v1096_v53  ;;  %3964 = vmatprep.mubr.msk.f32.mxu1 %vm4267_vm1, %v4264_v12 }
 0x3b3   :  { %v856_v14 = vmul.f32 %v4208_v13, %v4192_v40  ;;  %3972 = vmatprep.subr.mxu1 %v4264_v12 }
 0x3b4   :  { %v1520_v34 = vpop.permute.xlu1 %1519 }
 0x3b5   :  { %3960 = vmatmul.mubr.msk.f32.vlgmr.msra.gmra.mxu0 %vm164_vm2, %v856_v14  ;;  %v1324_v22 = vpop.permute.xlu0 %1323 }
 0x3b6   :  { %v4210_v16 = vpop.eup %4209  ;;  %3968 = vmatpush3.msra.mxu0 %v1172_v21  ;;  %3969 = vmatprep.mubr.msk.f32.mxu0 %vm4267_vm1, %v4264_v12 }
 0x3b7   :  { %v4212_v17 = vpop.eup %4211  ;;  %3977 = vmatprep.subr.mxu0 %v4264_v12  ;;  %v860_v18 = vmul.f32 %v4210_v16, %v4194_v42 }
 0x3b8   :  { %v858_v19 = vmul.f32 %v4212_v17, %v4196_v43  ;;  %v1518_v35 = vpop.permute.xlu1 %1517  ;;  %v1509_v43 = vsub.s32 1, %v4342_v7 }
 0x3b9   :  { %3970 = vmatmul.mubr.msk.f32.vlgmr.msra.gmra.mxu0 %vm164_vm2, %v860_v18  ;;  %v1522_v31 = vpop.permute.xlu0 %1521 }
 0x3ba   :  { %v4214_v23 = vpop.eup %4213  ;;  %3965 = vmatmul.mubr.msk.f32.vlgmr.msra.gmra.mxu1 %vm164_vm2, %v858_v19  ;;  %3978 = vmatpush3.msra.mxu0 %v1324_v22  ;;  %v4561_v49 = vrot.slane %v4348_v9, %v1509_v43 }
 0x3bb   :  { %v4216_v15 = vpop.eup %4215  ;;  %3973 = vmatpush3.msra.mxu1 %v1248_v54  ;;  %3974 = vmatprep.mubr.msk.f32.mxu1 %vm4267_vm1, %v4264_v12  ;;  %v864_v24 = vmul.f32 %v4214_v23, %v4483_v46 }
 0x3bc   :  { %3979 = vmatprep.mubr.msk.f32.mxu0 %vm4267_vm1, %v4264_v12  ;;  %3982 = vmatprep.subr.mxu1 %v4264_v12  ;;  %v862_v25 = vmul.f32 %v4216_v15, %v4485_v47 }
 0x3bd   :  { %3980 = vmatmul.mubr.msk.f32.vlgmr.msra.gmra.mxu0 %vm164_vm2, %v864_v24  ;;  %3987 = vmatprep.subr.mxu0 %v1522_v31 }
 0x3be   :  { %3975 = vmatmul.mubr.msk.f32.vlgmr.msra.gmra.mxu1 %vm164_vm2, %v862_v25  ;;  %3988 = vmatpush3.msra.mxu0 %v1522_v31 }
 0x3bf   :  { %v4218_v27 = vpop.eup %4217  ;;  %3983 = vmatpush3.msra.mxu1 %v1400_v26  ;;  %3984 = vmatprep.mubr.msk.f32.mxu1 %vm4267_vm1, %v4264_v12 }
 0x3c0   :  { %v866_v28 = vmul.f32 %v4218_v27, %v4491_v50  ;;  %3989 = vmatprep.subr.mxu0 %v1520_v34 }
 0x3c1   :  { %3990 = vmatpush3.msra.mxu0 %v1520_v34  ;;  %v1643_v34 = vsub.s32 3, %v4342_v7 }
 0x3c2   :  { %3985 = vmatmul.mubr.msk.f32.vlgmr.msra.gmra.mxu1 %vm164_vm2, %v866_v28  ;;  %3991 = vmatprep.subr.mxu0 %v1518_v35 }
 0x3c3   :  { %3992 = vmatpush3.msra.mxu0 %v1518_v35  ;;  %v21_v35 = vld [vmem:[%s4982_s1 + $0x10] sm:$0xff] }
 0x421   :  { %v939_v32 = vpop.f32.mrf.mxu0 }
 0x423   :  { %v3951_v33 = vpop.f32.mrf.mxu0 }
 0x424   :  { %v20_v33 = vld [vmem:[%s4982_s1 + $0x8] sm:$0xff] }
 0x471   :  { %v1015_v36 = vpop.f32.mrf.mxu1 }
 0x472   :  { %1476 = vrot.lane.b32.xlu0 %v1015_v36, %s4271_s13 }
 0x473   :  { %v3956_v37 = vpop.f32.mrf.mxu1 }
 0x475   :  { %v1091_v38 = vpop.f32.mrf.mxu0 }
 0x476   :  { %1480 = vrot.lane.b32.xlu0 %v1091_v38, %s4272_s14 }
 0x477   :  { %v3961_v39 = vpop.f32.mrf.mxu0 }
 0x479   :  { %v1243_v40 = vpop.f32.mrf.mxu0 }
 0x47a   :  { %v1167_v41 = vpop.f32.mrf.mxu1 }
 0x47b   :  { %1484 = vrot.lane.b32.xlu0 %v1167_v41, %s4273_s15  ;;  %v3971_v42 = vpop.f32.mrf.mxu0 }
 0x47c   :  { %v3966_v44 = vpop.f32.mrf.mxu1 }
 0x47d   :  { %v1395_v46 = vpop.f32.mrf.mxu0 }
 0x47e   :  { %v1319_v47 = vpop.f32.mrf.mxu1 }
 0x47f   :  { %1493 = vrot.lane.b32.xlu1 %v1319_v47, %s4271_s13  ;;  %v3981_v48 = vpop.f32.mrf.mxu0  ;;  %1515 = vrot.lane.b32.xlu0 %v4555_v45, %s4270_s6 }
 0x480   :  { %v3976_v50 = vpop.f32.mrf.mxu1 }
 0x482   :  { %v1471_v51 = vpop.f32.mrf.mxu1 }
 0x483   :  { %1497 = vrot.lane.b32.xlu1 %v1395_v46, %s4272_s14  ;;  %1528 = vrot.lane.b32.xlu0 %v4561_v49, %s4270_s6 }
 0x484   :  { %v3986_v52 = vpop.f32.mrf.mxu1 }
 0x487   :  { %1501 = vrot.lane.b32.xlu1 %v1471_v51, %s4273_s15 }
 0x4e4   :  { %v1477_v53 = vpop.permute.xlu0 %1476 }
 0x4e5   :  { %v1487_v55 = vsel %vm164_vm2, %v939_v32, %v1477_v53 }
 0x4e8   :  { %v1481_v54 = vpop.permute.xlu0 %1480 }
 0x4e9   :  { %v1489_v56 = vsel %vm1488_vm3, %v1487_v55, %v1481_v54 }
 0x4ed   :  { %v1485_v57 = vpop.permute.xlu0 %1484 }
 0x4ee   :  { %v1491_v21 = vsel %vm1490_vm4, %v1489_v56, %v1485_v57 }
 0x4ef   :  { %3995 = vmatprep.mubr.msk.f32.mxu0 %vm52_vm0, %v1491_v21 }
 0x4f1   :  { %v1494_v58 = vpop.permute.xlu1 %1493  ;;  %v1516_v59 = vpop.permute.xlu0 %1515 }
 0x4f2   :  { %3993 = vmatprep.subr.mxu0 %v1516_v59  ;;  %v1504_v61 = vsel %vm164_vm2, %v1243_v40, %v1494_v58 }
 0x4f3   :  { %3994 = vmatpush3.msra.mxu0 %v1516_v59 }
 0x4f4   :  { %4009 = vmatprep.subr.mxu0 %v4507_v20 }
 0x4f5   :  { %v1498_v60 = vpop.permute.xlu1 %1497  ;;  %v1529_v8 = vpop.permute.xlu0 %1528 }
 0x4f6   :  { %v1505_v62 = vsel %vm1488_vm3, %v1504_v61, %v1498_v60 }
 0x4f9   :  { %v1502_v63 = vpop.permute.xlu1 %1501 }
 0x4fa   :  { %v1506_v6 = vsel %vm1490_vm4, %v1505_v62, %v1502_v63 }
 0x4fb   :  { %3996 = vmatmul.mubr.msk.f32.vlgmr.msra.gmra.mxu0 %vm52_vm0, %v1506_v6 }
 0x4fc   :  { %4010 = vmatpush3.msra.mxu0 %v4507_v20 }
 0x4fd   :  { %4011 = vmatprep.subr.mxu0 %v4537_v29 }
 0x4fe   :  { %4012 = vmatpush3.msra.mxu0 %v4537_v29 }
 0x4ff   :  { %4013 = vmatprep.subr.mxu0 %v4544_v30 }
 0x500   :  { %4014 = vmatpush3.msra.mxu0 %v4544_v30 }
 0x501   :  { %4015 = vmatprep.subr.mxu0 %v4555_v45 }
 0x502   :  { %4016 = vmatpush3.msra.mxu0 %v4555_v45 }
 0x503   :  { %4030 = vmatprep.subr.mxu0 %v4264_v12 }
 0x5bb   :  { %v3997_v10 = vpop.f32.mrf.mxu0 }
 0x5bc   :  { %v1609_v13 = vadd.f32 %v3997_v10, %v1529_v8 }
 0x5bd   :  { %v1603_v14 = vpop.f32.mrf.mxu0 }
 0x5be   :  { %v1604_v16 = vadd.f32 %v1603_v14, %v1529_v8  ;;  %v1613_v17 = vadd.f32 %v1609_v13, %v4336_v5 }
 0x5c0   :  { %v1617_v18 = vsel %vm52_vm0, %v1613_v17, 0.0  ;;  %v1612_v19 = vadd.f32 %v1604_v16, %v4314_v2  ;;  %v19_v2 = vld [vmem:[%s4982_s1] sm:$0xff] }
 0x5c1   :  { %1618 = vadd.xlane.f32.xlu0 %v1617_v18  ;;  %4017 = vmatprep.mubr.msk.f32.mxu0 %vm52_vm0, %v19_v2 }
 0x5c2   :  { %v1614_v22 = vsel %vm52_vm0, %v1612_v19, 0.0  ;;  %4018 = vmatmul.mubr.msk.f32.vlgmr.msra.gmra.mxu0 %vm52_vm0, %v20_v33 }
 0x5c3   :  { %1615 = vadd.xlane.f32.xlu1 %v1614_v22  ;;  %4020 = vmatprep.mubr.msk.f32.mxu0 %vm52_vm0, %v21_v35 }
 0x64a   :  { %v1619_v23 = vpop.xlane.xlu0 %1618 }
 0x64b   :  { %v1622_v15 = vmul.f32 0.03125, %v1619_v23 }
 0x64c   :  { %v1616_v24 = vpop.xlane.xlu1 %1615 }
 0x64d   :  { %v1624_v25 = vsub.f32 %v1613_v17, %v1622_v15  ;;  %v1621_v26 = vmul.f32 0.03125, %v1616_v24 }
 0x64f   :  { %v1623_v27 = vsub.f32 %v1612_v19, %v1621_v26  ;;  %v1626_v28 = vmul.f32 %v1624_v25, %v1624_v25 }
 0x651   :  { %v1630_v31 = vsel %vm52_vm0, %v1626_v28, 0.0  ;;  %v1625_v32 = vmul.f32 %v1623_v27, %v1623_v27 }
 0x652   :  { %1631 = vadd.xlane.f32.xlu1 %v1630_v31 }
 0x653   :  { %v1627_v5 = vsel %vm52_vm0, %v1625_v32, 0.0 }
 0x654   :  { %1628 = vadd.xlane.f32.xlu0 %v1627_v5 }
 0x663   :  { %1661 = vrot.lane.b32.xlu1 %v4308_v1, %s4274_s18  ;;  %v4606_v1 = vrot.slane %v4348_v9, %v1643_v34 }
 0x667   :  { %1659 = vrot.lane.b32.xlu1 %v4320_v3, %s4274_s18 }
 0x66a   :  { %1663 = vrot.lane.b32.xlu0 %v4303_v0, %s4274_s18  ;;  %v22_v0 = vld [vmem:[%s4982_s1 + $0x18] sm:$0xff] }
 0x66b   :  { %1657 = vrot.lane.b32.xlu1 %v4329_v4, %s4274_s18  ;;  %4021 = vmatmul.mubr.msk.f32.gmra.mxu0 %vm52_vm0, %v22_v0 }
 0x66c   :  { %4034 = vmatprep.mubr.msk.f32.mxu0 %vm4267_vm1, %v4264_v12 }
 0x66e   :  { %1648 = vrot.lane.b32.xlu0 %v4606_v1, %s4269_s5 }
 0x672   :  { %1670 = vrot.lane.b32.xlu0 %v4351_v11, %s4274_s18 }
 0x682   :  { %v4019_v53 = vpop.f32.mrf.mxu0 }
 0x683   :  { %v4638_v54 = vadd.f32 %v4019_v53, %v4561_v49 }
 0x684   :  { %v1832_v55 = vpop.f32.mrf.mxu0 }
 0x685   :  { %v4641_v56 = vadd.f32 %v1832_v55, %v4561_v49  ;;  %1875 = vrot.lane.b32.xlu1 %v4638_v54, %s4266_s29 }
 0x687   :  { %1873 = vrot.lane.b32.xlu0 %v4641_v56, %s4266_s29 }
 0x689   :  { %1883 = vrot.lane.b32.xlu1 %v4638_v54, %s4265_s0 }
 0x68b   :  { %1879 = vrot.lane.b32.xlu0 %v4638_v54, %s4268_s30 }
 0x68f   :  { %1877 = vrot.lane.b32.xlu0 %v4641_v56, %s4268_s30 }
 0x6db   :  { %v1632_v3 = vpop.xlane.xlu1 %1631 }
 0x6dc   :  { %v1634_v4 = vmul.f32 0.03125, %v1632_v3 }
 0x6dd   :  { %v1629_v9 = vpop.xlane.xlu0 %1628 }
 0x6de   :  { %v1636_v36 = vadd.f32 1e-05, %v1634_v4  ;;  %v1633_v11 = vmul.f32 0.03125, %v1629_v9 }
 0x6df   :  { %v1662_v37 = vpop.permute.xlu1 %1661 }
 0x6e0   :  { %4219 = vrsqrt.f32 %v1636_v36  ;;  %v1635_v38 = vadd.f32 1e-05, %v1633_v11 }
 0x6e1   :  { %v1664_v39 = vpop.permute.xlu0 %1663 }
 0x6e2   :  { %4221 = vrsqrt.f32 %v1635_v38  ;;  %3998 = vmatprep.subr.mxu1 %v1664_v39 }
 0x6e3   :  { %3999 = vmatpush3.msra.mxu1 %v1664_v39  ;;  %v1660_v40 = vpop.permute.xlu1 %1659 }
 0x6e4   :  { %4000 = vmatprep.subr.mxu1 %v1662_v37 }
 0x6e5   :  { %4001 = vmatpush3.msra.mxu1 %v1662_v37  ;;  %v1649_v50 = vpop.permute.xlu0 %1648 }
 0x6e6   :  { %4002 = vmatprep.subr.mxu1 %v1660_v40 }
 0x6e7   :  { %4003 = vmatpush3.msra.mxu1 %v1660_v40  ;;  %v1658_v41 = vpop.permute.xlu1 %1657 }
 0x6e8   :  { %4004 = vmatprep.subr.mxu1 %v1658_v41 }
 0x6e9   :  { %4005 = vmatpush3.msra.mxu1 %v1658_v41  ;;  %v1671_v58 = vpop.permute.xlu0 %1670 }
 0x6ea   :  { %4023 = vmatprep.subr.mxu1 %v4264_v12 }
 0x6ed   :  { %v4220_v42 = vpop.eup %4219 }
 0x6ee   :  { %v1640_v43 = vmul.f32 %v4220_v42, %v1624_v25 }
 0x6ef   :  { %v4222_v44 = vpop.eup %4221 }
 0x6f0   :  { %v1639_v46 = vmul.f32 %v4222_v44, %v1623_v27  ;;  %v1646_v47 = vmul.f32 %v4606_v1, %v1640_v43 }
 0x6f2   :  { %v1645_v48 = vmul.f32 %v4606_v1, %v1639_v46  ;;  %v4629_v52 = vadd.f32 %v1649_v50, %v1646_v47 }
 0x6f4   :  { %v4627_v51 = vadd.f32 %v1649_v50, %v1645_v48 }
 0x6f6   :  { %4006 = vmatprep.mubr.msk.f32.mxu1 %vm52_vm0, %v4627_v51 }
 0x6f7   :  { %4007 = vmatmul.mubr.msk.f32.vlgmr.msra.gmra.mxu1 %vm52_vm0, %v4629_v52  ;;  %v4664_v59 = vpop.permute.xlu1 %1875 }
 0x6f8   :  { %4027 = vmatprep.mubr.msk.f32.mxu1 %vm4267_vm1, %v4264_v12  ;;  %4024 = vmatpush3.xpose.msk.msra.mxu1 %vm164_vm2, %v4638_v54 }
 0x6f9   :  { %4025 = vmatprep.subr.mxu1 %v4264_v12  ;;  %4031 = vmatpush3.xpose.msk.msra.mxu0 %vm164_vm2, %v4664_v59  ;;  %v4669_v60 = vpop.permute.xlu0 %1873 }
 0x6fa   :  { %4032 = vmatprep.subr.mxu0 %v4264_v12 }
 0x6fb   :  { %v4710_v18 = vpop.permute.xlu1 %1883 }
 0x6fc   :  { %4026 = vmatpush3.xpose.msk.msra.mxu1 %vm164_vm2, %v4641_v56 }
 0x6fd   :  { %4037 = vmatprep.subr.mxu1 %v4264_v12  ;;  %4033 = vmatpush3.xpose.msk.msra.mxu0 %vm164_vm2, %v4669_v60  ;;  %v4674_v6 = vpop.permute.xlu0 %1879 }
 0x6fe   :  { %4044 = vmatprep.subr.mxu0 %v4264_v12 }
 0x701   :  { %v4686_v13 = vpop.permute.xlu0 %1877 }
 0x72b   :  { %v4022_v57 = vpop.f32.mrf.mxu0 }
 0x72c   :  { %v4660_v21 = vadd.f32 %v4022_v57, %v4561_v49 }
 0x72d   :  { %v1842_v14 = vpop.f32.mrf.mxu0 }
 0x72e   :  { %1889 = vrot.lane.b32.xlu0 %v4660_v21, %s4266_s29  ;;  %v4696_v16 = vadd.f32 %v1842_v14, %v4561_v49 }
 0x7a0   :  { %v4708_v17 = vpop.permute.xlu0 %1889 }
 0x7b7   :  { %v4008_v61 = vpop.f32.mrf.mxu1 }
 0x7b8   :  { %v1751_v10 = vadd.f32 %v4008_v61, %v1671_v58 }
 0x7b9   :  { %v1745_v62 = vpop.f32.mrf.mxu1 }
 0x7ba   :  { %v1746_v63 = vadd.f32 %v1745_v62, %v1671_v58  ;;  %v1903_v27 = vmul.f32 0.35355338, %v1751_v10 }
 0x7bc   :  { %v1899_v8 = vmul.f32 0.35355338, %v1746_v63  ;;  %1855 = vrot.lane.b32.xlu0 %v1746_v63, %s4268_s30  ;;  %1852 = vrot.lane.b32.xlu1 %v1746_v63, %s4266_s29 }
 0x7be   :  { %4028 = vmatmul.mubr.msk.f32.vlgmr.msra.gmra.mxu1 %vm164_vm2, %v1899_v8 }
 0x7bf   :  { %4038 = vmatpush3.xpose.msk.msra.mxu1 %vm164_vm2, %v4674_v6  ;;  %4041 = vmatprep.mubr.msk.f32.mxu1 %vm4267_vm1, %v4264_v12 }
 0x7c0   :  { %1862 = vrot.lane.b32.xlu0 %v1751_v10, %s4266_s29  ;;  %1881 = vrot.lane.b32.xlu1 %v4641_v56, %s4265_s0 }
 0x7c1   :  { %4039 = vmatprep.subr.mxu1 %v4264_v12 }
 0x7c3   :  { %4040 = vmatpush3.xpose.msk.msra.mxu1 %vm164_vm2, %v4686_v13 }
 0x7c4   :  { %1897 = vrot.lane.b32.xlu0 %v4660_v21, %s4265_s0  ;;  %1858 = vrot.lane.b32.xlu1 %v1746_v63, %s4265_s0 }
 0x7c5   :  { %4051 = vmatprep.subr.mxu1 %v4264_v12 }
 0x7c8   :  { %1865 = vrot.lane.b32.xlu0 %v1751_v10, %s4268_s30  ;;  %1887 = vrot.lane.b32.xlu1 %v4696_v16, %s4266_s29 }
 0x7cc   :  { %1868 = vrot.lane.b32.xlu0 %v1751_v10, %s4265_s0  ;;  %1893 = vrot.lane.b32.xlu1 %v4660_v21, %s4268_s30 }
 0x7d0   :  { %1891 = vrot.lane.b32.xlu1 %v4696_v16, %s4268_s30 }
 0x7d4   :  { %1895 = vrot.lane.b32.xlu1 %v4696_v16, %s4265_s0 }
 0x82e   :  { %v1856_v19 = vpop.permute.xlu0 %1855  ;;  %v1853_v22 = vpop.permute.xlu1 %1852 }
 0x82f   :  { %v1901_v23 = vmul.f32 0.35355338, %v1856_v19  ;;  %v1900_v15 = vmul.f32 0.35355338, %v1853_v22 }
 0x831   :  { %4035 = vmatmul.mubr.msk.f32.vlgmr.msra.gmra.mxu0 %vm164_vm2, %v1900_v15  ;;  %4042 = vmatmul.mubr.msk.f32.vlgmr.msra.gmra.mxu1 %vm164_vm2, %v1901_v23 }
 0x832   :  { %4045 = vmatpush3.xpose.msk.msra.mxu0 %vm164_vm2, %v4710_v18  ;;  %4052 = vmatpush3.xpose.msk.msra.mxu1 %vm164_vm2, %v4660_v21  ;;  %v4718_v24 = vpop.permute.xlu1 %1881  ;;  %v1863_v25 = vpop.permute.xlu0 %1862 }
 0x833   :  { %4046 = vmatprep.subr.mxu0 %v4264_v12  ;;  %4053 = vmatprep.subr.mxu1 %v4264_v12  ;;  %v1904_v2 = vmul.f32 0.35355338, %v1863_v25 }
 0x834   :  { %4055 = vmatprep.mubr.msk.f32.mxu1 %vm4267_vm1, %v4264_v12  ;;  %4048 = vmatprep.mubr.msk.f32.mxu0 %vm4267_vm1, %v4264_v12 }
 0x836   :  { %4047 = vmatpush3.xpose.msk.msra.mxu0 %vm164_vm2, %v4718_v24  ;;  %4054 = vmatpush3.xpose.msk.msra.mxu1 %vm164_vm2, %v4696_v16  ;;  %v1859_v26 = vpop.permute.xlu1 %1858  ;;  %v4732_v31 = vpop.permute.xlu0 %1897 }
 0x837   :  { %v1902_v28 = vmul.f32 0.35355338, %v1859_v26  ;;  %4058 = vmatprep.subr.mxu0 %v4264_v12  ;;  %4065 = vmatprep.subr.mxu1 %v4264_v12 }
 0x839   :  { %4056 = vmatmul.mubr.msk.f32.vlgmr.msra.gmra.mxu1 %vm164_vm2, %v1903_v27  ;;  %4049 = vmatmul.mubr.msk.f32.vlgmr.msra.gmra.mxu0 %vm164_vm2, %v1902_v28 }
 0x83a   :  { %4059 = vmatpush3.xpose.msk.msra.mxu0 %vm164_vm2, %v4708_v17  ;;  %v4738_v32 = vpop.permute.xlu1 %1887  ;;  %4062 = vmatprep.mubr.msk.f32.mxu0 %vm4267_vm1, %v4264_v12  ;;  %v1866_v33 = vpop.permute.xlu0 %1865 }
 0x83b   :  { %4060 = vmatprep.subr.mxu0 %v4264_v12  ;;  %4069 = vmatprep.mubr.msk.f32.mxu1 %vm4267_vm1, %v4264_v12  ;;  %v1905_v35 = vmul.f32 0.35355338, %v1866_v33 }
 0x83e   :  { %4061 = vmatpush3.xpose.msk.msra.mxu0 %vm164_vm2, %v4738_v32  ;;  %v4747_v5 = vpop.permute.xlu1 %1893  ;;  %v1869_v0 = vpop.permute.xlu0 %1868 }
 0x83f   :  { %4066 = vmatpush3.xpose.msk.msra.mxu1 %vm164_vm2, %v4747_v5  ;;  %4072 = vmatprep.subr.mxu0 %v4264_v12  ;;  %v1906_v4 = vmul.f32 0.35355338, %v1869_v0 }
 0x840   :  { %4067 = vmatprep.subr.mxu1 %v4264_v12 }
 0x841   :  { %4063 = vmatmul.mubr.msk.f32.vlgmr.msra.gmra.mxu0 %vm164_vm2, %v1904_v2 }
 0x842   :  { %4073 = vmatpush3.xpose.msk.msra.mxu0 %vm164_vm2, %v4732_v31  ;;  %v4756_v34 = vpop.permute.xlu1 %1891  ;;  %4076 = vmatprep.mubr.msk.f32.mxu0 %vm4267_vm1, %v4264_v12 }
 0x843   :  { %4068 = vmatpush3.xpose.msk.msra.mxu1 %vm164_vm2, %v4756_v34  ;;  %4074 = vmatprep.subr.mxu0 %v4264_v12 }
 0x844   :  { %4079 = vmatprep.subr.mxu1 %v4264_v12 }
 0x846   :  { %v4764_v3 = vpop.permute.xlu1 %1895  ;;  %4070 = vmatmul.mubr.msk.f32.vlgmr.msra.gmra.mxu1 %vm164_vm2, %v1905_v35 }
 0x847   :  { %4075 = vmatpush3.xpose.msk.msra.mxu0 %vm164_vm2, %v4764_v3  ;;  %4083 = vmatprep.mubr.msk.f32.mxu1 %vm4267_vm1, %v4264_v12 }
 0x848   :  { %4093 = vmatprep.subr.mxu0 %v4264_v12 }
 0x84a   :  { %4077 = vmatmul.mubr.msk.f32.vlgmr.msra.gmra.mxu0 %vm164_vm2, %v1906_v4 }
 0x84b   :  { %4097 = vmatprep.mubr.msk.f32.mxu0 %vm4267_vm1, %v4264_v12 }
 0x87e   :  { %v1980_v9 = vpop.f32.mrf.mxu1 }
 0x87f   :  { %v2523_v36 = vsel %vm1488_vm3, %v1980_v9, -inf }
 0x880   :  { %2524 = vmax.xlane.f32.xlu1 %v2523_v36  ;;  %v4029_v11 = vpop.f32.mrf.mxu1 }
 0x8f1   :  { %v2057_v37 = vpop.f32.mrf.mxu0  ;;  %v2134_v38 = vpop.f32.mrf.mxu1 }
 0x8f2   :  { %v2526_v39 = vsel %vm1488_vm3, %v2057_v37, -inf  ;;  %v2529_v42 = vsel %vm1488_vm3, %v2134_v38, -inf }
 0x8f3   :  { %2527 = vmax.xlane.f32.xlu0 %v2526_v39  ;;  %v4036_v40 = vpop.f32.mrf.mxu0  ;;  %v4043_v41 = vpop.f32.mrf.mxu1 }
 0x8f7   :  { %2530 = vmax.xlane.f32.xlu0 %v2529_v42 }
 0x8f9   :  { %v2288_v43 = vpop.f32.mrf.mxu1  ;;  %v2211_v44 = vpop.f32.mrf.mxu0 }
 0x8fa   :  { %v2532_v46 = vsel %vm1488_vm3, %v2211_v44, -inf  ;;  %v2535_v47 = vsel %vm1488_vm3, %v2288_v43, -inf }
 0x8fb   :  { %v4057_v48 = vpop.f32.mrf.mxu1  ;;  %v4050_v50 = vpop.f32.mrf.mxu0  ;;  %2533 = vmax.xlane.f32.xlu1 %v2532_v46  ;;  %2536 = vmax.xlane.f32.xlu0 %v2535_v47 }
 0x901   :  { %v2365_v53 = vpop.f32.mrf.mxu0 }
 0x902   :  { %v2538_v55 = vsel %vm1488_vm3, %v2365_v53, -inf }
 0x903   :  { %v4064_v57 = vpop.f32.mrf.mxu0  ;;  %2539 = vmax.xlane.f32.xlu1 %v2538_v55 }
 0x906   :  { %v2442_v58 = vpop.f32.mrf.mxu1 }
 0x907   :  { %v2541_v61 = vsel %vm1488_vm3, %v2442_v58, -inf }
 0x908   :  { %2542 = vmax.xlane.f32.xlu0 %v2541_v61  ;;  %v4071_v62 = vpop.f32.mrf.mxu1 }
 0x90a   :  { %v4782_v63 = vpop.f32.mrf.mxu0 }
 0x90c   :  { %v4078_v8 = vpop.f32.mrf.mxu0 }
 0x914   :  { %2611 = vrot.lane.b32.xlu1 %v4641_v56, %s4269_s5  ;;  %v2525_v56 = vpop.xlane.xlu1 %2524 }
 0x918   :  { %2692 = vrot.lane.b32.xlu1 %v4664_v59, %s4269_s5  ;;  %v2547_v59 = vsub.f32 %v1980_v9, %v2525_v56 }
 0x91e   :  { %2613 = vrot.lane.b32.xlu0 %v4638_v54, %s4269_s5  ;;  %v2544_v54 = vsel %vm1488_vm3, %v4782_v63, -inf }
 0x922   :  { %2690 = vrot.lane.b32.xlu0 %v4669_v60, %s4269_s5  ;;  %v2555_v60 = vmul.f32 1.442695, %v2547_v59 }
 0x924   :  { %4223 = vpow2.f32 %v2555_v60 }
 0x926   :  { %2850 = vrot.lane.b32.xlu0 %v4710_v18, %s4269_s5 }
 0x92a   :  { %2848 = vrot.lane.b32.xlu0 %v4718_v24, %s4269_s5 }
 0x92e   :  { %3008 = vrot.lane.b32.xlu0 %v4708_v17, %s4269_s5 }
 0x931   :  { %v4806_v10 = vpop.eup %4223 }
 0x932   :  { %3006 = vrot.lane.b32.xlu0 %v4738_v32, %s4269_s5  ;;  %v2571_v14 = vsel %vm1488_vm3, %v4806_v10, 0.0 }
 0x936   :  { %3166 = vrot.lane.b32.xlu0 %v4732_v31, %s4269_s5 }
 0x93c   :  { %2545 = vmax.xlane.f32.xlu1 %v2544_v54 }
 0x94d   :  { %2771 = vrot.lane.b32.xlu1 %v4674_v6, %s4269_s5 }
 0x951   :  { %2769 = vrot.lane.b32.xlu1 %v4686_v13, %s4269_s5 }
 0x955   :  { %2929 = vrot.lane.b32.xlu1 %v4660_v21, %s4269_s5  ;;  %2572 = vadd.xlane.f32.xlu0 %v2571_v14 }
 0x959   :  { %2927 = vrot.lane.b32.xlu1 %v4696_v16, %s4269_s5 }
 0x95d   :  { %3087 = vrot.lane.b32.xlu1 %v4747_v5, %s4269_s5 }
 0x97c   :  { %v2528_v17 = vpop.xlane.xlu0 %2527 }
 0x97d   :  { %v2548_v6 = vsub.f32 %v2057_v37, %v2528_v17 }
 0x97f   :  { %v2557_v18 = vmul.f32 1.442695, %v2548_v6 }
 0x980   :  { %v2531_v19 = vpop.xlane.xlu0 %2530 }
 0x981   :  { %4225 = vpow2.f32 %v2557_v18  ;;  %v2549_v22 = vsub.f32 %v2134_v38, %v2531_v19 }
 0x983   :  { %v2559_v13 = vmul.f32 1.442695, %v2549_v22 }
 0x984   :  { %v2534_v23 = vpop.xlane.xlu1 %2533  ;;  %v2537_v15 = vpop.xlane.xlu0 %2536 }
 0x985   :  { %4227 = vpow2.f32 %v2559_v13  ;;  %v2550_v24 = vsub.f32 %v2211_v44, %v2534_v23  ;;  %v2551_v25 = vsub.f32 %v2288_v43, %v2537_v15 }
 0x987   :  { %v2561_v21 = vmul.f32 1.442695, %v2550_v24  ;;  %v2563_v26 = vmul.f32 1.442695, %v2551_v25 }
 0x989   :  { %4229 = vpow2.f32 %v2561_v21 }
 0x98a   :  { %4231 = vpow2.f32 %v2563_v26 }
 0x98c   :  { %v2540_v16 = vpop.xlane.xlu1 %2539 }
 0x98d   :  { %v2552_v27 = vsub.f32 %v2365_v53, %v2540_v16 }
 0x98e   :  { %v4818_v28 = vpop.eup %4225 }
 0x98f   :  { %v2565_v31 = vmul.f32 1.442695, %v2552_v27  ;;  %v2574_v32 = vsel %vm1488_vm3, %v4818_v28, 0.0 }
 0x990   :  { %2575 = vadd.xlane.f32.xlu1 %v2574_v32  ;;  %v2612_v11 = vpop.permute.xlu1 %2611 }
 0x991   :  { %4233 = vpow2.f32 %v2565_v31  ;;  %v2543_v5 = vpop.xlane.xlu0 %2542 }
 0x992   :  { %v4822_v2 = vpop.eup %4227  ;;  %v2553_v33 = vsub.f32 %v2442_v58, %v2543_v5 }
 0x993   :  { %v2577_v35 = vsel %vm1488_vm3, %v4822_v2, 0.0 }
 0x994   :  { %v2567_v0 = vmul.f32 1.442695, %v2553_v33  ;;  %2578 = vadd.xlane.f32.xlu0 %v2577_v35  ;;  %v2693_v44 = vpop.permute.xlu1 %2692 }
 0x995   :  { %v2614_v4 = vpop.permute.xlu0 %2613 }
 0x996   :  { %v4826_v9 = vpop.eup %4229  ;;  %4235 = vpow2.f32 %v2567_v0  ;;  %4080 = vmatpush3.msra.mxu1 %v2614_v4 }
 0x997   :  { %v4828_v36 = vpop.eup %4231  ;;  %4081 = vmatprep.subr.mxu1 %v4264_v12  ;;  %v2580_v37 = vsel %vm1488_vm3, %v4826_v9, 0.0 }
 0x998   :  { %2581 = vadd.xlane.f32.xlu1 %v2580_v37  ;;  %v2583_v38 = vsel %vm1488_vm3, %v4828_v36, 0.0  ;;  %4082 = vmatpush3.msra.mxu1 %v2612_v11 }
 0x999   :  { %2584 = vadd.xlane.f32.xlu0 %v2583_v38  ;;  %4086 = vmatprep.subr.mxu1 %v4264_v12  ;;  %v2691_v43 = vpop.permute.xlu0 %2690 }
 0x99d   :  { %v2851_v46 = vpop.permute.xlu0 %2850 }
 0x99e   :  { %v4836_v39 = vpop.eup %4233 }
 0x99f   :  { %v2586_v40 = vsel %vm1488_vm3, %v4836_v39, 0.0 }
 0x9a0   :  { %2587 = vadd.xlane.f32.xlu1 %v2586_v40 }
 0x9a1   :  { %v2849_v50 = vpop.permute.xlu0 %2848 }
 0x9a3   :  { %v4840_v41 = vpop.eup %4235 }
 0x9a4   :  { %v2589_v42 = vsel %vm1488_vm3, %v4840_v41, 0.0 }
 0x9a5   :  { %2590 = vadd.xlane.f32.xlu0 %v2589_v42  ;;  %v3009_v57 = vpop.permute.xlu0 %3008 }
 0x9bb   :  { %3164 = vrot.lane.b32.xlu0 %v4764_v3, %s4269_s5 }
 0x9bf   :  { %3277 = vrot.lane.b32.xlu0 %v4537_v29, %s4274_s18  ;;  %v3007_v29 = vpop.permute.xlu0 %3006 }
 0x9c3   :  { %3275 = vrot.lane.b32.xlu0 %v4544_v30, %s4274_s18  ;;  %v3167_v61 = vpop.permute.xlu0 %3166 }
 0x9c5   :  { %v2546_v47 = vpop.xlane.xlu1 %2545 }
 0x9c6   :  { %v2554_v48 = vsub.f32 %v4782_v63, %v2546_v47 }
 0x9c8   :  { %v2569_v53 = vmul.f32 1.442695, %v2554_v48 }
 0x9c9   :  { %v2772_v55 = vpop.permute.xlu1 %2771 }
 0x9ca   :  { %4237 = vpow2.f32 %v2569_v53  ;;  %4094 = vmatpush3.msra.mxu0 %v2772_v55 }
 0x9cb   :  { %4095 = vmatprep.subr.mxu0 %v4264_v12 }
 0x9cd   :  { %v2770_v3 = vpop.permute.xlu1 %2769 }
 0x9ce   :  { %4096 = vmatpush3.msra.mxu0 %v2770_v3 }
 0x9cf   :  { %4107 = vmatprep.subr.mxu0 %v4264_v12 }
 0x9d1   :  { %v2930_v56 = vpop.permute.xlu1 %2929 }
 0x9d5   :  { %v2928_v54 = vpop.permute.xlu1 %2927 }
 0x9d7   :  { %v4853_v58 = vpop.eup %4237 }
 0x9d8   :  { %v2592_v30 = vsel %vm1488_vm3, %v4853_v58, 0.0 }
 0x9d9   :  { %2593 = vadd.xlane.f32.xlu1 %v2592_v30 }
 0x9de   :  { %v2573_v62 = vpop.xlane.xlu0 %2572 }
 0x9df   :  { %4239 = vrcp.f32 %v2573_v62 }
 0x9ea   :  { %3085 = vrot.lane.b32.xlu1 %v4756_v34, %s4269_s5  ;;  %v3088_v34 = vpop.permute.xlu1 %3087 }
 0x9ec   :  { %v4240_v63 = vpop.eup %4239 }
 0x9ed   :  { %v2596_v8 = vmul.f32 %v4240_v63, %v4806_v10 }
 0x9ee   :  { %3279 = vrot.lane.b32.xlu1 %v4507_v20, %s4274_s18 }
 0x9ef   :  { %4084 = vmatmul.mubr.msk.f32.vlgmr.msra.gmra.mxu1 %vm1488_vm3, %v2596_v8 }
 0x9f0   :  { %4087 = vmatpush3.msra.mxu1 %v2693_v44  ;;  %4090 = vmatprep.mubr.msk.f32.mxu1 %vm4267_vm1, %v4264_v12 }
 0x9f1   :  { %4088 = vmatprep.subr.mxu1 %v4264_v12 }
 0x9f2   :  { %4089 = vmatpush3.msra.mxu1 %v2691_v43 }
 0x9f3   :  { %4100 = vmatprep.subr.mxu1 %v4264_v12 }
 0xa19   :  { %v2576_v59 = vpop.xlane.xlu1 %2575 }
 0xa1a   :  { %4241 = vrcp.f32 %v2576_v59 }
 0xa1d   :  { %v2579_v60 = vpop.xlane.xlu0 %2578 }
 0xa1e   :  { %4243 = vrcp.f32 %v2579_v60 }
 0xa21   :  { %v2582_v10 = vpop.xlane.xlu1 %2581 }
 0xa22   :  { %4245 = vrcp.f32 %v2582_v10  ;;  %v2585_v20 = vpop.xlane.xlu0 %2584 }
 0xa23   :  { %4247 = vrcp.f32 %v2585_v20 }
 0xa27   :  { %v4242_v14 = vpop.eup %4241 }
 0xa28   :  { %v2598_v17 = vmul.f32 %v4242_v14, %v4818_v28  ;;  %v34_v14 = vld [vmem:[%s4979_s2 + $0x58] sm:$0xff] }
 0xa29   :  { %v2588_v6 = vpop.xlane.xlu1 %2587 }
 0xa2a   :  { %4249 = vrcp.f32 %v2588_v6  ;;  %4091 = vmatmul.mubr.msk.f32.vlgmr.msra.gmra.mxu1 %vm1488_vm3, %v2598_v17  ;;  %v25_v17 = vld [vmem:[%s4979_s2 + $0x10] sm:$0xff] }
 0xa2b   :  { %v4244_v18 = vpop.eup %4243  ;;  %4101 = vmatpush3.msra.mxu1 %v2851_v46  ;;  %4104 = vmatprep.mubr.msk.f32.mxu1 %vm4267_vm1, %v4264_v12 }
 0xa2c   :  { %4102 = vmatprep.subr.mxu1 %v4264_v12  ;;  %v2600_v19 = vmul.f32 %v4244_v18, %v4822_v2 }
 0xa2d   :  { %4103 = vmatpush3.msra.mxu1 %v2849_v50 }
 0xa2e   :  { %4098 = vmatmul.mubr.msk.f32.vlgmr.msra.gmra.mxu0 %vm1488_vm3, %v2600_v19  ;;  %4114 = vmatprep.subr.mxu1 %v4264_v12  ;;  %v2591_v24 = vpop.xlane.xlu0 %2590 }
 0xa2f   :  { %v4246_v22 = vpop.eup %4245  ;;  %4108 = vmatpush3.msra.mxu0 %v2930_v56  ;;  %4111 = vmatprep.mubr.msk.f32.mxu0 %vm4267_vm1, %v4264_v12  ;;  %4251 = vrcp.f32 %v2591_v24 }
 0xa30   :  { %v4248_v13 = vpop.eup %4247  ;;  %4109 = vmatprep.subr.mxu0 %v4264_v12  ;;  %v2602_v23 = vmul.f32 %v4246_v22, %v4826_v9 }
 0xa31   :  { %4110 = vmatpush3.msra.mxu0 %v2928_v54  ;;  %v2604_v15 = vmul.f32 %v4248_v13, %v4828_v36 }
 0xa32   :  { %4121 = vmatprep.subr.mxu0 %v4264_v12  ;;  %4105 = vmatmul.mubr.msk.f32.vlgmr.msra.gmra.mxu1 %vm1488_vm3, %v2602_v23  ;;  %v3165_v26 = vpop.permute.xlu0 %3164 }
 0xa33   :  { %4112 = vmatmul.mubr.msk.f32.vlgmr.msra.gmra.mxu0 %vm1488_vm3, %v2604_v15  ;;  %4115 = vmatpush3.msra.mxu1 %v3009_v57 }
 0xa34   :  { %4122 = vmatpush3.msra.mxu0 %v3088_v34  ;;  %4116 = vmatprep.subr.mxu1 %v4264_v12 }
 0xa35   :  { %4117 = vmatpush3.msra.mxu1 %v3007_v29  ;;  %4118 = vmatprep.mubr.msk.f32.mxu1 %vm4267_vm1, %v4264_v12 }
 0xa36   :  { %4128 = vmatprep.subr.mxu1 %v4264_v12  ;;  %4123 = vmatprep.subr.mxu0 %v4264_v12 }
 0xa37   :  { %v4250_v25 = vpop.eup %4249  ;;  %4125 = vmatprep.mubr.msk.f32.mxu0 %vm4267_vm1, %v4264_v12 }
 0xa38   :  { %v2606_v21 = vmul.f32 %v4250_v25, %v4836_v39 }
 0xa3a   :  { %4119 = vmatmul.mubr.msk.f32.vlgmr.msra.gmra.mxu1 %vm1488_vm3, %v2606_v21 }
 0xa3b   :  { %4129 = vmatpush3.msra.mxu1 %v3167_v61  ;;  %4132 = vmatprep.mubr.msk.f32.mxu1 %vm4267_vm1, %v4264_v12 }
 0xa3c   :  { %4130 = vmatprep.subr.mxu1 %v4264_v12  ;;  %v4252_v27 = vpop.eup %4251  ;;  %v3278_v12 = vpop.permute.xlu0 %3277 }
 0xa3d   :  { %4131 = vmatpush3.msra.mxu1 %v3165_v26  ;;  %v2608_v31 = vmul.f32 %v4252_v27, %v4840_v41 }
 0xa3e   :  { %4146 = vmatprep.subr.mxu1 %v34_v14 }
 0xa40   :  { %v3276_v0 = vpop.permute.xlu0 %3275 }
 0xa62   :  { %v2594_v16 = vpop.xlane.xlu1 %2593 }
 0xa63   :  { %4253 = vrcp.f32 %v2594_v16 }
 0xa66   :  { %v3086_v28 = vpop.permute.xlu1 %3085 }
 0xa67   :  { %4124 = vmatpush3.msra.mxu0 %v3086_v28 }
 0xa68   :  { %4126 = vmatmul.mubr.msk.f32.vlgmr.msra.gmra.mxu0 %vm1488_vm3, %v2608_v31 }
 0xa6a   :  { %v3280_v35 = vpop.permute.xlu1 %3279 }
 0xa6b   :  { %4135 = vmatprep.subr.mxu0 %v3280_v35 }
 0xa6c   :  { %4136 = vmatpush3.msra.mxu0 %v3280_v35 }
 0xa6d   :  { %4137 = vmatprep.subr.mxu0 %v3278_v12 }
 0xa6e   :  { %4138 = vmatpush3.msra.mxu0 %v3278_v12 }
 0xa6f   :  { %4139 = vmatprep.subr.mxu0 %v3276_v0 }
 0xa70   :  { %v4254_v32 = vpop.eup %4253  ;;  %4140 = vmatpush3.msra.mxu0 %v3276_v0 }
 0xa71   :  { %v2610_v5 = vmul.f32 %v4254_v32, %v4853_v58 }
 0xa73   :  { %4133 = vmatmul.mubr.msk.f32.vlgmr.msra.gmra.mxu1 %vm1488_vm3, %v2610_v5 }
 0xa74   :  { %4147 = vmatpush3.msra.mxu1 %v34_v14 }
 0xaaf   :  { %v2686_v2 = vpop.f32.mrf.mxu1 }
 0xab1   :  { %v4085_v33 = vpop.f32.mrf.mxu1 }
 0xaea   :  { %v2765_v4 = vpop.f32.mrf.mxu1 }
 0xaeb   :  { %3244 = vrot.lane.b32.xlu1 %v2765_v4, %s4271_s13 }
 0xaec   :  { %v4092_v9 = vpop.f32.mrf.mxu1 }
 0xaee   :  { %v2844_v36 = vpop.f32.mrf.mxu0 }
 0xaef   :  { %3248 = vrot.lane.b32.xlu1 %v2844_v36, %s4272_s14  ;;  %v3409_v36 = vsub.s32 2, %v4342_v7 }
 0xaf0   :  { %v4099_v11 = vpop.f32.mrf.mxu0 }
 0xaf2   :  { %v2923_v37 = vpop.f32.mrf.mxu1 }
 0xaf3   :  { %v3002_v38 = vpop.f32.mrf.mxu0  ;;  %3252 = vrot.lane.b32.xlu1 %v2923_v37, %s4273_s15 }
 0xaf4   :  { %v4106_v39 = vpop.f32.mrf.mxu1 }
 0xaf5   :  { %v4113_v40 = vpop.f32.mrf.mxu0 }
 0xaf7   :  { %3273 = vrot.lane.b32.xlu1 %v4555_v45, %s4274_s18 }
 0xafa   :  { %v3081_v41 = vpop.f32.mrf.mxu1 }
 0xafb   :  { %3259 = vrot.lane.b32.xlu0 %v3081_v41, %s4271_s13  ;;  %3285 = vrot.lane.b32.xlu1 %v4561_v49, %s4274_s18  ;;  %v4263_v41 = vld [vmem:[%s4981_s3] sm:$0xff] }
 0xafc   :  { %v4120_v42 = vpop.f32.mrf.mxu1 }
 0xafd   :  { %v3410_v42 = vrot.slane %v4263_v41, %v3409_v36 }
 0xb28   :  { %v3160_v43 = vpop.f32.mrf.mxu0 }
 0xb29   :  { %3263 = vrot.lane.b32.xlu0 %v3160_v43, %s4272_s14 }
 0xb2a   :  { %v4127_v44 = vpop.f32.mrf.mxu0 }
 0xb33   :  { %v3239_v46 = vpop.f32.mrf.mxu1 }
 0xb34   :  { %3267 = vrot.lane.b32.xlu0 %v3239_v46, %s4273_s15 }
 0xb35   :  { %v4134_v47 = vpop.f32.mrf.mxu1 }
 0xb5d   :  { %v3245_v48 = vpop.permute.xlu1 %3244 }
 0xb5e   :  { %v3255_v53 = vsel %vm164_vm2, %v2686_v2, %v3245_v48 }
 0xb61   :  { %v3249_v50 = vpop.permute.xlu1 %3248 }
 0xb62   :  { %v3256_v45 = vsel %vm1488_vm3, %v3255_v53, %v3249_v50 }
 0xb65   :  { %v3253_v55 = vpop.permute.xlu1 %3252 }
 0xb66   :  { %v3257_v3 = vsel %vm1490_vm4, %v3256_v45, %v3253_v55 }
 0xb67   :  { %4143 = vmatprep.mubr.msk.f32.mxu0 %vm52_vm0, %v3257_v3 }
 0xb69   :  { %v3274_v49 = vpop.permute.xlu1 %3273 }
 0xb6a   :  { %4141 = vmatprep.subr.mxu0 %v3274_v49 }
 0xb6b   :  { %4142 = vmatpush3.msra.mxu0 %v3274_v49 }
 0xb6d   :  { %v3260_v57 = vpop.permute.xlu0 %3259  ;;  %v3286_v63 = vpop.permute.xlu1 %3285 }
 0xb6e   :  { %v3270_v58 = vsel %vm164_vm2, %v3002_v38, %v3260_v57 }
 0xb9b   :  { %v3264_v29 = vpop.permute.xlu0 %3263 }
 0xb9c   :  { %v3271_v30 = vsel %vm1488_vm3, %v3270_v58, %v3264_v29 }
 0xba6   :  { %v3268_v61 = vpop.permute.xlu0 %3267 }
 0xba7   :  { %v3272_v62 = vsel %vm1490_vm4, %v3271_v30, %v3268_v61 }
 0xba8   :  { %4144 = vmatmul.mubr.msk.f32.vlgmr.msra.gmra.mxu0 %vm52_vm0, %v3272_v62 }
 0xc68   :  { %v4145_v8 = vpop.f32.mrf.mxu0 }
 0xc69   :  { %v3366_v56 = vadd.f32 %v4145_v8, %v3286_v63 }
 0xc6a   :  { %v3360_v54 = vpop.f32.mrf.mxu0 }
 0xc6b   :  { %v3370_v34 = vadd.f32 %v3366_v56, %v4629_v52  ;;  %v3361_v59 = vadd.f32 %v3360_v54, %v3286_v63  ;;  %v28_v52 = vld [vmem:[%s4979_s2 + $0x28] sm:$0xff] }
 0xc6d   :  { %v3369_v60 = vadd.f32 %v3361_v59, %v4627_v51  ;;  %v3374_v10 = vsel %vm52_vm0, %v3370_v34, 0.0  ;;  %v31_v51 = vld [vmem:[%s4979_s2 + $0x40] sm:$0xff] }
 0xc6e   :  { %3375 = vadd.xlane.f32.xlu1 %v3374_v10  ;;  %4148 = vmatprep.subr.mxu1 %v31_v51 }
 0xc6f   :  { %v3371_v20 = vsel %vm52_vm0, %v3369_v60, 0.0  ;;  %4149 = vmatpush3.msra.mxu1 %v31_v51 }
 0xc70   :  { %3372 = vadd.xlane.f32.xlu0 %v3371_v20  ;;  %4150 = vmatprep.subr.mxu1 %v28_v52 }
 0xc71   :  { %4151 = vmatpush3.msra.mxu1 %v28_v52 }
 0xc72   :  { %4152 = vmatprep.subr.mxu1 %v25_v17 }
 0xc73   :  { %4153 = vmatpush3.msra.mxu1 %v25_v17 }
 0xc7f   :  { %3397 = vrot.lane.b32.xlu1 %v4606_v1, %s4270_s6 }
 0xc83   :  { %46 = vrot.lane.b32.xlu1 %v34_v14, %s4269_s5 }
 0xc87   :  { %44 = vrot.lane.b32.xlu1 %v31_v51, %s4269_s5 }
 0xc8b   :  { %40 = vrot.lane.b32.xlu1 %v25_v17, %s4269_s5 }
 0xcf7   :  { %v3376_v6 = vpop.xlane.xlu1 %3375 }
 0xcf8   :  { %v3378_v18 = vmul.f32 0.03125, %v3376_v6 }
 0xcf9   :  { %v3373_v19 = vpop.xlane.xlu0 %3372 }
 0xcfa   :  { %v3377_v22 = vmul.f32 0.03125, %v3373_v19  ;;  %v3380_v13 = vsub.f32 %v3370_v34, %v3378_v18 }
 0xcfb   :  { %v3398_v26 = vpop.permute.xlu1 %3397 }
 0xcfc   :  { %v3379_v23 = vsub.f32 %v3369_v60, %v3377_v22  ;;  %v3382_v25 = vmul.f32 %v3380_v13, %v3380_v13  ;;  %v3634_v22 = vsub.s32 4, %v4342_v7 }
 0xcfe   :  { %v3381_v15 = vmul.f32 %v3379_v23, %v3379_v23  ;;  %v3386_v21 = vsel %vm52_vm0, %v3382_v25, 0.0 }
 0xcff   :  { %v47_v16 = vpop.permute.xlu1 %46 }
 0xd00   :  { %v3383_v24 = vsel %vm52_vm0, %v3381_v15, 0.0 }
 0xd01   :  { %3384 = vadd.xlane.f32.xlu0 %v3383_v24 }
 0xd03   :  { %v45_v27 = vpop.permute.xlu1 %44 }
 0xd04   :  { %3506 = vrot.lane.b32.xlu1 %v45_v27, %s4270_s6 }
 0xd05   :  { %3387 = vadd.xlane.f32.xlu0 %v3386_v21 }
 0xd07   :  { %v41_v28 = vpop.permute.xlu1 %40 }
 0xd08   :  { %3502 = vrot.lane.b32.xlu1 %v41_v28, %s4270_s6 }
 0xd0c   :  { %3498 = vrot.lane.b32.xlu1 %v31_v51, %s4270_s6 }
 0xd10   :  { %3494 = vrot.lane.b32.xlu1 %v25_v17, %s4270_s6 }
 0xd1b   :  { %3402 = vrot.lane.b32.xlu0 %v4606_v1, %s4274_s18 }
 0xd1f   :  { %42 = vrot.lane.b32.xlu0 %v28_v52, %s4269_s5 }
 0xd23   :  { %3508 = vrot.lane.b32.xlu0 %v47_v16, %s4270_s6 }
 0xd76   :  { %v3507_v11 = vpop.permute.xlu1 %3506 }
 0xd7a   :  { %v3503_v46 = vpop.permute.xlu1 %3502 }
 0xd7e   :  { %v3499_v48 = vpop.permute.xlu1 %3498 }
 0xd82   :  { %v3495_v45 = vpop.permute.xlu1 %3494 }
 0xd8a   :  { %v3385_v31 = vpop.xlane.xlu0 %3384 }
 0xd8b   :  { %v3389_v32 = vmul.f32 0.03125, %v3385_v31 }
 0xd8d   :  { %v3391_v5 = vadd.f32 1e-05, %v3389_v32 }
 0xd8e   :  { %v3388_v1 = vpop.xlane.xlu0 %3387 }
 0xd8f   :  { %4255 = vrsqrt.f32 %v3391_v5  ;;  %v3390_v2 = vmul.f32 0.03125, %v3388_v1 }
 0xd91   :  { %v3392_v33 = vadd.f32 1e-05, %v3390_v2 }
 0xd92   :  { %v3403_v35 = vpop.permute.xlu0 %3402 }
 0xd93   :  { %4257 = vrsqrt.f32 %v3392_v33 }
 0xd96   :  { %v43_v12 = vpop.permute.xlu0 %42 }
 0xd97   :  { %3504 = vrot.lane.b32.xlu0 %v43_v12, %s4270_s6 }
 0xd9a   :  { %v3509_v0 = vpop.permute.xlu0 %3508 }
 0xd9b   :  { %3500 = vrot.lane.b32.xlu0 %v34_v14, %s4270_s6  ;;  %4157 = vmatprep.subr.mxu0 %v3509_v0 }
 0xd9c   :  { %v4256_v4 = vpop.eup %4255  ;;  %4158 = vmatpush3.msra.mxu0 %v3509_v0 }
 0xd9d   :  { %v3395_v9 = vmul.f32 %v4256_v4, %v3379_v23  ;;  %4159 = vmatprep.subr.mxu0 %v3507_v11 }
 0xd9e   :  { %4160 = vmatpush3.msra.mxu0 %v3507_v11 }
 0xd9f   :  { %v3400_v37 = vmul.f32 %v3398_v26, %v3395_v9  ;;  %3496 = vrot.lane.b32.xlu0 %v28_v52, %s4270_s6 }
 0xda0   :  { %v4258_v38 = vpop.eup %4257 }
 0xda1   :  { %v3396_v39 = vmul.f32 %v4258_v38, %v3380_v13  ;;  %v3405_v40 = vadd.f32 %v3403_v35, %v3400_v37  ;;  %v3635_v13 = vrot.slane %v4263_v41, %v3634_v22 }
 0xda3   :  { %v3401_v43 = vmul.f32 %v3398_v26, %v3396_v39  ;;  %4154 = vmatprep.mubr.msk.f32.mxu1 %vm52_vm0, %v3405_v40  ;;  %3519 = vrot.lane.b32.xlu0 %v3410_v42, %s4270_s6 }
 0xda5   :  { %v3406_v44 = vadd.f32 %v3403_v35, %v3401_v43 }
 0xda7   :  { %4155 = vmatmul.mubr.msk.f32.vlgmr.msra.gmra.mxu1 %vm52_vm0, %v3406_v44 }
 0xe09   :  { %v3505_v47 = vpop.permute.xlu0 %3504 }
 0xe0a   :  { %4161 = vmatprep.subr.mxu0 %v3505_v47 }
 0xe0b   :  { %4162 = vmatpush3.msra.mxu0 %v3505_v47 }
 0xe0c   :  { %4163 = vmatprep.subr.mxu0 %v3503_v46 }
 0xe0d   :  { %4164 = vmatpush3.msra.mxu0 %v3503_v46  ;;  %v3501_v50 = vpop.permute.xlu0 %3500 }
 0xe0e   :  { %4165 = vmatprep.subr.mxu0 %v3501_v50 }
 0xe0f   :  { %4166 = vmatpush3.msra.mxu0 %v3501_v50 }
 0xe10   :  { %4167 = vmatprep.subr.mxu0 %v3499_v48 }
 0xe11   :  { %4168 = vmatpush3.msra.mxu0 %v3499_v48  ;;  %v3497_v53 = vpop.permute.xlu0 %3496 }
 0xe12   :  { %4169 = vmatprep.subr.mxu0 %v3497_v53 }
 0xe13   :  { %4170 = vmatpush3.msra.mxu0 %v3497_v53 }
 0xe14   :  { %4171 = vmatprep.subr.mxu0 %v3495_v45 }
 0xe15   :  { %4172 = vmatpush3.msra.mxu0 %v3495_v45  ;;  %v3520_v30 = vpop.permute.xlu0 %3519 }
 0xe67   :  { %v4156_v55 = vpop.f32.mrf.mxu1 }
 0xe68   :  { %v3489_v3 = vadd.f32 %v4156_v55, %v3410_v42 }
 0xe69   :  { %v3483_v49 = vpop.f32.mrf.mxu1 }
 0xe6a   :  { %v3484_v57 = vadd.f32 %v3483_v49, %v3410_v42  ;;  %v3493_v58 = vmax.f32 %v3489_v3, 0.0 }
 0xe6c   :  { %v3492_v29 = vmax.f32 %v3484_v57, 0.0 }
 0xe6e   :  { %4173 = vmatprep.mubr.msk.f32.mxu0 %vm3522_vm5, %v3492_v29 }
 0xe6f   :  { %4174 = vmatmul.mubr.msk.f32.vlgmr.msra.gmra.mxu0 %vm3522_vm5, %v3493_v58 }
 0xf2f   :  { %v4175_v61 = vpop.f32.mrf.mxu0 }
 0xf30   :  { %v3601_v62 = vadd.f32 %v4175_v61, %v3520_v30 }
 0xf31   :  { %v3595_v63 = vpop.f32.mrf.mxu0 }
 0xf32   :  { %v3605_v8 = vadd.f32 %v3601_v62, %v3406_v44  ;;  %v3596_v56 = vadd.f32 %v3595_v63, %v3520_v30 }
 0xf34   :  { %v3604_v54 = vadd.f32 %v3596_v56, %v3405_v40  ;;  %v3609_v34 = vsel %vm52_vm0, %v3605_v8, 0.0 }
 0xf35   :  { %3610 = vadd.xlane.f32.xlu0 %v3609_v34 }
 0xf36   :  { %v3606_v59 = vsel %vm52_vm0, %v3604_v54, 0.0 }
 0xf37   :  { %3607 = vadd.xlane.f32.xlu1 %v3606_v59 }
 0xfbe   :  { %v3611_v60 = vpop.xlane.xlu0 %3610 }
 0xfbf   :  { %v3613_v10 = vmul.f32 0.03125, %v3611_v60 }
 0xfc0   :  { %v3608_v20 = vpop.xlane.xlu1 %3607 }
 0xfc1   :  { %v3615_v14 = vsub.f32 %v3605_v8, %v3613_v10  ;;  %v3612_v51 = vmul.f32 0.03125, %v3608_v20 }
 0xfc3   :  { %v3614_v52 = vsub.f32 %v3604_v54, %v3612_v51  ;;  %v3617_v17 = vmul.f32 %v3615_v14, %v3615_v14 }
 0xfc5   :  { %v3621_v6 = vsel %vm52_vm0, %v3617_v17, 0.0  ;;  %v3616_v18 = vmul.f32 %v3614_v52, %v3614_v52 }
 0xfc6   :  { %3622 = vadd.xlane.f32.xlu1 %v3621_v6 }
 0xfc7   :  { %v3618_v19 = vsel %vm52_vm0, %v3616_v18, 0.0 }
 0xfc8   :  { %3619 = vadd.xlane.f32.xlu0 %v3618_v19 }
 0xfde   :  { %3639 = vrot.lane.b32.xlu0 %v3635_v13, %s4269_s5 }
0x104f   :  { %v3623_v23 = vpop.xlane.xlu1 %3622 }
0x1050   :  { %v3625_v15 = vmul.f32 0.03125, %v3623_v23 }
0x1051   :  { %v3620_v24 = vpop.xlane.xlu0 %3619 }
0x1052   :  { %v3627_v25 = vadd.f32 1e-05, %v3625_v15  ;;  %v3624_v21 = vmul.f32 0.03125, %v3620_v24 }
0x1054   :  { %4259 = vrsqrt.f32 %v3627_v25  ;;  %v3626_v26 = vadd.f32 1e-05, %v3624_v21 }
0x1055   :  { %v3640_v31 = vpop.permute.xlu0 %3639 }
0x1056   :  { %4261 = vrsqrt.f32 %v3626_v26 }
0x1061   :  { %v4260_v16 = vpop.eup %4259 }
0x1062   :  { %v3631_v27 = vmul.f32 %v4260_v16, %v3615_v14 }
0x1063   :  { %v4262_v28 = vpop.eup %4261 }
0x1064   :  { %v3630_v32 = vmul.f32 %v4262_v28, %v3614_v52  ;;  %v3637_v5 = vmul.f32 %v3635_v13, %v3631_v27 }
0x1066   :  { %v3636_v1 = vmul.f32 %v3635_v13, %v3630_v32  ;;  %v3643_v2 = vadd.f32 %v3640_v31, %v3637_v5 }
0x1068   :  { %v3642_v7 = vadd.f32 %v3640_v31, %v3636_v1  ;;  %v3662_v33 = vrot.slane %v3643_v2, 1  ;;  %v3666_v12 = vrot.slane %v3643_v2, 2  ;;  %v3670_v9 = vrot.slane %v3643_v2, 3 }
0x106a   :  { %3663 = vrot.lane.b32.xlu0 %v3662_v33, %s4274_s18  ;;  %v3645_v35 = vrot.slane %v3642_v7, 1  ;;  %v3649_v0 = vrot.slane %v3642_v7, 2  ;;  %v3653_v4 = vrot.slane %v3642_v7, 3 }
0x106c   :  { %3646 = vrot.lane.b32.xlu1 %v3645_v35, %s4274_s18 }
0x106e   :  { %3667 = vrot.lane.b32.xlu0 %v3666_v12, %s4270_s6 }
0x1070   :  { %3650 = vrot.lane.b32.xlu1 %v3649_v0, %s4270_s6 }
0x1074   :  { %3654 = vrot.lane.b32.xlu1 %v3653_v4, %s4269_s5 }
0x1078   :  { %3671 = vrot.lane.b32.xlu1 %v3670_v9, %s4269_s5 }
0x10dc   :  { %v3664_v11 = vpop.permute.xlu0 %3663 }
0x10dd   :  { %v3674_v43 = vsel %vm52_vm0, %v3643_v2, %v3664_v11 }
0x10de   :  { %v3647_v36 = vpop.permute.xlu1 %3646 }
0x10df   :  { %v3657_v38 = vsel %vm52_vm0, %v3642_v7, %v3647_v36 }
0x10e0   :  { %v3668_v41 = vpop.permute.xlu0 %3667 }
0x10e1   :  { %v3675_v46 = vsel %vm3522_vm5, %v3674_v43, %v3668_v41 }
0x10e2   :  { %v3651_v37 = vpop.permute.xlu1 %3650 }
0x10e3   :  { %v3658_v39 = vsel %vm3522_vm5, %v3657_v38, %v3651_v37 }
0x10e6   :  { %v3655_v40 = vpop.permute.xlu1 %3654 }
0x10e7   :  { %v3660_v42 = vsel %vm3659_vm6, %v3658_v39, %v3655_v40 }
0x10e8   :  { %v3678_v44 = vrot.slane %v3660_v42, 3 }
0x10ea   :  { %v3672_v47 = vpop.permute.xlu1 %3671  ;;  %v3686_v45 = vsel %vm3685_vm7, %v3660_v42, %v3678_v44 }
0x10eb   :  { %v3676_v48 = vsel %vm3659_vm6, %v3675_v46, %v3672_v47 }
0x10ec   :  { %v3681_v50 = vrot.slane %v3676_v48, 6  ;;  %v3683_v53 = vrot.slane %v3676_v48, 1 }
0x10ee   :  { %v3688_v55 = vsel %vm3687_vm8, %v3686_v45, %v3681_v50 }
0x10ef   :  { %v3690_v3 = vsel %vm3689_vm9, %v3688_v55, %v3683_v53 }
0x10f0   :  { %3691 = vst [vmem:[%s4983_s4] sm:$0xf] %v3690_v3 }

</bundles_post_ra>
